<compile_context>
chip_gen: v6e
topology: v6e:2x2x1
jax: 0.10.0
libtpu: 0.0.40
codegen_flags: <defaults>
</compile_context>

<pallas_src>
import numpy as np

import jax
import jax.numpy as jnp
from jax.experimental import pallas as pl
from jax.experimental.pallas import tpu as pltpu

# ----------------------------- config (small) -----------------------------
B = 2          # batch
C = 4          # obs channels
IMG = 16       # obs spatial size
ACT_DIM = 6    # action dim
DETER = 64     # GRU / deterministic state size
STOCH = 32     # stochastic latent size
EMBED = 128    # encoder embedding size
HID = 64       # MLP hidden size

C1 = 8                     # conv1 out channels
C2 = 16                    # conv2 out channels
OH1 = IMG // 2             # 8   conv1 output spatial
OH2 = IMG // 4             # 4   conv2 output spatial
NP2 = OH2 * OH2            # 16  conv2 output pixels per image
OBS_FLAT = C * IMG * IMG   # 1024
H1_FLAT = OH1 * OH1 * C1   # 512  folded conv1 output width
H2_FLAT = NP2 * C2         # 256  folded conv2 output width
STATS_W = 384              # packed stats/latents/h/heads output width (3 x 128 lanes)

# ---- f32 parameter-slab layout (biases + the two scalar-head weight rows) ----
SLAB_W = 2944                               # 23 * 128 lanes
_SB_B1 = slice(0, 512)                      # conv1 bias, broadcast over pixels
_SB_B2 = slice(512, 768)                    # conv2 bias, broadcast over pixels
_SB_FCB = slice(768, 896)                   # enc_fc bias
_SB_BR = slice(896, 960)                    # GRU r-gate bias (b_ir + b_hr)
_SB_BZ = slice(960, 1024)                   # GRU z-gate bias (b_iz + b_hz)
_SB_BIN = slice(1024, 1088)                 # GRU n-gate input bias
_SB_BHN = slice(1088, 1152)                 # GRU n-gate hidden bias (r-gated)
_SB_PQ1B = slice(1152, 1280)                # [prior1_b | post1_b]
_SB_PQ2B = slice(1280, 1408)                # [prior_mean_b | post_mean_b | prior_raw_b | post_raw_b]
_SB_HD1B = slice(1408, 1664)                # [dec1_b | rew1_b | cont1_b]
_SB_DEC2B = slice(1664, 2688)               # dec2 bias
_SB_REWB = slice(2688, 2689)                # reward head bias (scalar)
_SB_CONTB = slice(2689, 2690)               # continue head bias (scalar)
_SB_REWW = slice(2816, 2880)                # reward head weight row (64)
_SB_CONTW = slice(2880, 2944)               # continue head weight row (64)


def _vmem():
    return pl.BlockSpec(memory_space=pltpu.MemorySpace.VMEM)


def _softplus(x):
    # stable softplus using only exp/log/abs/max (all Mosaic-supported), f32 path
    return jnp.maximum(x, 0.0) + jnp.log(1.0 + jnp.exp(-jnp.abs(x)))


# ----------------------------- the single fused kernel -----------------------------
def _core_kernel(obs_ref, act_ref, h0_ref, noise_ref,
                 w1_ref, w2_ref, fcw_ref, wi_ref, wh_ref,
                 pq1_ref, pq2_ref, hd1_ref, dec2_ref, slab_ref,
                 recon_ref, stats_ref):

    def mm(a, w_ref):
        # bf16 weights, bf16-cast activations, f32 accumulate
        return jnp.dot(a.astype(jnp.bfloat16), w_ref[...],
                       preferred_element_type=jnp.float32)

    # ---- CNN encoder: both convs are im2col-folded dense GEMMs on the flat obs ----
    h1 = jnp.maximum(mm(obs_ref[...], w1_ref) + slab_ref[:, _SB_B1], 0.0)     # (B, 512)
    h2 = jnp.maximum(mm(h1, w2_ref) + slab_ref[:, _SB_B2], 0.0)               # (B, 256)
    embed = jnp.maximum(mm(h2, fcw_ref) + slab_ref[:, _SB_FCB], 0.0)          # (B, 128)

    # ---- GRU cell (torch.nn.GRUCell semantics, gate order r|z|n): 2 MXU pushes ----
    h_prev = h0_ref[...]                                                      # (B, 64)
    gi = mm(act_ref[...], wi_ref)                                             # (B, 192)
    gh = mm(h_prev, wh_ref)                                                   # (B, 192)
    r = jax.nn.sigmoid(gi[:, 0:DETER] + gh[:, 0:DETER] + slab_ref[:, _SB_BR])
    z = jax.nn.sigmoid(gi[:, DETER:2 * DETER] + gh[:, DETER:2 * DETER] + slab_ref[:, _SB_BZ])
    n = jnp.tanh(gi[:, 2 * DETER:3 * DETER] + slab_ref[:, _SB_BIN]
                 + r * (gh[:, 2 * DETER:3 * DETER] + slab_ref[:, _SB_BHN]))
    h = (1.0 - z) * n + z * h_prev                                            # (B, 64)

    # ---- prior + posterior MLPs (combined): 2 MXU pushes ----
    he = jnp.concatenate([h, embed], axis=-1)                                 # (B, 192)
    y1 = jnp.maximum(mm(he, pq1_ref) + slab_ref[:, _SB_PQ1B], 0.0)            # (B, 128)
    ms = mm(y1, pq2_ref) + slab_ref[:, _SB_PQ2B]                              # (B, 128) [mean64|raw64]
    mean_all = ms[:, 0:2 * STOCH]                                             # [prior_mean | post_mean]
    std_all = _softplus(ms[:, 2 * STOCH:4 * STOCH]) + 0.1                     # [prior_std  | post_std ]
    z_all = mean_all + std_all * noise_ref[...]                               # [z_prior | z_posterior]
    zh = jnp.concatenate([z_all, h], axis=-1)                                 # (B, 128) heads input

    # packed stats slab: three unmasked (B,128) stores
    stats_ref[:, 0:128] = jnp.concatenate([mean_all, std_all], axis=-1)
    stats_ref[:, 128:256] = zh

    # ---- decoder / reward / continue heads ----
    y3 = jnp.maximum(mm(zh, hd1_ref) + slab_ref[:, _SB_HD1B], 0.0)            # (B, 256) [dec|rew|cont]
    recon_ref[...] = mm(y3[:, 0:EMBED], dec2_ref) + slab_ref[:, _SB_DEC2B]    # (B, 1024)

    # reward / continue are scalar heads -> VPU row-dot + lane reduce (no 98%-zero MXU weight)
    reward = jnp.sum(y3[:, EMBED:EMBED + HID] * slab_ref[:, _SB_REWW],
                     axis=-1, keepdims=True) + slab_ref[:, _SB_REWB]          # (B, 1)
    cont = jax.nn.sigmoid(
        jnp.sum(y3[:, EMBED + HID:EMBED + 2 * HID] * slab_ref[:, _SB_CONTW],
                axis=-1, keepdims=True) + slab_ref[:, _SB_CONTB])             # (B, 1)
    col = jax.lax.broadcasted_iota(jnp.int32, (zh.shape[0], 128), 1)
    heads = jnp.where(col == 0, jnp.broadcast_to(reward, col.shape),
                      jnp.where(col == 1, jnp.broadcast_to(cont, col.shape), 0.0))
    stats_ref[:, 256:384] = heads


_core_call = pl.pallas_call(
    _core_kernel,
    out_shape=(jax.ShapeDtypeStruct((B, OBS_FLAT), jnp.float32),   # reconstructed obs (flat)
               jax.ShapeDtypeStruct((B, STATS_W), jnp.float32)),   # packed stats / latents / h / heads
    in_specs=[_vmem()] * 14,
    out_specs=(_vmem(), _vmem()),
)


# ----------------------------- parameter init (PyTorch-like logical params) -----------------------------
def _unif(key, shape, fan_in):
    s = 1.0 / float(fan_in) ** 0.5
    return jax.random.uniform(key, shape, jnp.float32, -s, s)


def init_params(key):
    keys = jax.random.split(key, 24)
    p = {}
    p["conv1_w"] = _unif(keys[0], (C1, C, 3, 3), 9 * C)
    p["conv1_b"] = _unif(keys[1], (C1,), 9 * C)
    p["conv2_w"] = _unif(keys[2], (C2, C1, 3, 3), 9 * C1)
    p["conv2_b"] = _unif(keys[3], (C2,), 9 * C1)
    p["enc_fc_w"] = _unif(keys[4], (H2_FLAT, EMBED), H2_FLAT)     # rows in torch (C2,OH2,OH2) flatten order
    p["enc_fc_b"] = _unif(keys[5], (EMBED,), H2_FLAT)
    p["gru_wi"] = _unif(keys[6], (ACT_DIM, 3 * DETER), DETER)     # gate order r|z|n
    p["gru_wh"] = _unif(keys[7], (DETER, 3 * DETER), DETER)
    p["gru_bi"] = _unif(keys[8], (3 * DETER,), DETER)
    p["gru_bh"] = _unif(keys[9], (3 * DETER,), DETER)
    p["prior1_w"] = _unif(keys[10], (DETER, HID), DETER)
    p["prior1_b"] = _unif(keys[10], (HID,), DETER)
    p["prior2_w"] = _unif(keys[11], (HID, 2 * STOCH), HID)
    p["prior2_b"] = _unif(keys[11], (2 * STOCH,), HID)
    p["post1_w"] = _unif(keys[12], (DETER + EMBED, HID), DETER + EMBED)
    p["post1_b"] = _unif(keys[12], (HID,), DETER + EMBED)
    p["post2_w"] = _unif(keys[13], (HID, 2 * STOCH), HID)
    p["post2_b"] = _unif(keys[13], (2 * STOCH,), HID)
    p["dec1_w"] = _unif(keys[14], (STOCH + DETER, EMBED), STOCH + DETER)
    p["dec1_b"] = _unif(keys[14], (EMBED,), STOCH + DETER)
    p["dec2_w"] = _unif(keys[15], (EMBED, OBS_FLAT), EMBED)
    p["dec2_b"] = _unif(keys[15], (OBS_FLAT,), EMBED)
    p["rew1_w"] = _unif(keys[16], (STOCH + DETER, HID), STOCH + DETER)
    p["rew1_b"] = _unif(keys[16], (HID,), STOCH + DETER)
    p["rew2_w"] = _unif(keys[17], (HID, 1), HID)
    p["rew2_b"] = _unif(keys[17], (1,), HID)
    p["cont1_w"] = _unif(keys[18], (STOCH + DETER, HID), STOCH + DETER)
    p["cont1_b"] = _unif(keys[18], (HID,), STOCH + DETER)
    p["cont2_w"] = _unif(keys[19], (HID, 1), HID)
    p["cont2_b"] = _unif(keys[19], (1,), HID)
    return p


# ----------------------------- pack: fold im2col into dense GEMM weights -----------------------------
def _fold_conv_np(w, in_hw, stride, pad, in_layout):
    """Fold a 3x3 conv (PyTorch (out,in,kh,kw) weight) + its im2col gather into one dense matrix.

    Input flat layout: 'chw' (c*HW + y*W + x) or 'hwc' (y*W*C + x*C + c).
    Output flat layout: (oy*OW + ox)*OC + oc   (pixel-major, channel fastest).
    """
    out_ch, in_ch, k, _ = w.shape
    out_hw = (in_hw + 2 * pad - k) // stride + 1
    if in_layout == "chw":
        wf = np.zeros((in_ch, in_hw, in_hw, out_hw, out_hw, out_ch), np.float32)
    else:
        wf = np.zeros((in_hw, in_hw, in_ch, out_hw, out_hw, out_ch), np.float32)
    for oy in range(out_hw):
        for ox in range(out_hw):
            for ki in range(k):
                for kj in range(k):
                    iy = stride * oy - pad + ki
                    ix = stride * ox - pad + kj
                    if 0 <= iy < in_hw and 0 <= ix < in_hw:
                        wij = np.transpose(w[:, :, ki, kj])      # (in_ch, out_ch)
                        if in_layout == "chw":
                            wf[:, iy, ix, oy, ox, :] = wij
                        else:
                            wf[iy, ix, :, oy, ox, :] = wij
    return wf.reshape(in_ch * in_hw * in_hw, out_hw * out_hw * out_ch)


def pack_params(p):
    """One-time repack of logical params into the fused-kernel layouts (host-side numpy)."""
    f = lambda a: np.asarray(a, np.float32)
    bf = lambda a: jnp.asarray(a, jnp.bfloat16)

    # convs folded into dense GEMMs (consume flat NCHW obs / flat (p,c) conv1 output directly)
    w1f = _fold_conv_np(f(p["conv1_w"]), IMG, 2, 1, "chw")            # (1024, 512)
    w2f = _fold_conv_np(f(p["conv2_w"]), OH1, 2, 1, "hwc")            # (512, 256)
    b1f = np.tile(f(p["conv1_b"]), OH1 * OH1)                         # (512,)
    b2f = np.tile(f(p["conv2_b"]), NP2)                               # (256,)

    # enc_fc rows permuted from torch (c2, p) flatten order to our (p, c2) conv2 output order
    idx = np.arange(H2_FLAT)
    pix, ch = idx // C2, idx % C2
    fcw = f(p["enc_fc_w"])[ch * NP2 + pix, :]                         # (256, 128)

    # GRU: packed gate weights (r|z|n); biases folded where torch folds them
    bi, bh = f(p["gru_bi"]), f(p["gru_bh"])
    H = DETER
    br = bi[0:H] + bh[0:H]
    bz = bi[H:2 * H] + bh[H:2 * H]
    bin_ = bi[2 * H:3 * H]
    bhn = bh[2 * H:3 * H]

    # prior1/post1 combined: input [h(64) | embed(128)], output [prior_hid(64) | post_hid(64)]
    pq1 = np.zeros((DETER + EMBED, 2 * HID), np.float32)
    pq1[0:DETER, 0:HID] = f(p["prior1_w"])
    pq1[0:DETER, HID:] = f(p["post1_w"])[0:DETER]
    pq1[DETER:, HID:] = f(p["post1_w"])[DETER:]
    pq1b = np.concatenate([f(p["prior1_b"]), f(p["post1_b"])])

    # prior2/post2 combined: output [prior_mean|post_mean|prior_raw|post_raw] (one MXU push)
    S = STOCH
    pw, qw = f(p["prior2_w"]), f(p["post2_w"])
    pq2 = np.zeros((2 * HID, 4 * S), np.float32)
    pq2[0:HID, 0:S] = pw[:, 0:S]
    pq2[HID:, S:2 * S] = qw[:, 0:S]
    pq2[0:HID, 2 * S:3 * S] = pw[:, S:]
    pq2[HID:, 3 * S:4 * S] = qw[:, S:]
    pq2b = np.concatenate([f(p["prior2_b"])[0:S], f(p["post2_b"])[0:S],
                           f(p["prior2_b"])[S:], f(p["post2_b"])[S:]])

    # dec1/rew1/cont1 combined: input [z_prior|z_post|h] (z_prior rows zeroed), output [dec|rew|cont]
    hd1 = np.zeros((2 * S + DETER, EMBED + 2 * HID), np.float32)      # (128, 256)
    d1, r1, c1w = f(p["dec1_w"]), f(p["rew1_w"]), f(p["cont1_w"])
    hd1[S:2 * S, 0:EMBED] = d1[0:S]
    hd1[2 * S:, 0:EMBED] = d1[S:]
    hd1[S:2 * S, EMBED:EMBED + HID] = r1[0:S]
    hd1[2 * S:, EMBED:EMBED + HID] = r1[S:]
    hd1[S:2 * S, EMBED + HID:] = c1w[0:S]
    hd1[2 * S:, EMBED + HID:] = c1w[S:]
    hd1b = np.concatenate([f(p["dec1_b"]), f(p["rew1_b"]), f(p["cont1_b"])])

    # all biases + scalar-head weight rows in one f32 slab (one DMA)
    slab = np.zeros((1, SLAB_W), np.float32)
    slab[0, _SB_B1] = b1f
    slab[0, _SB_B2] = b2f
    slab[0, _SB_FCB] = f(p["enc_fc_b"])
    slab[0, _SB_BR] = br
    slab[0, _SB_BZ] = bz
    slab[0, _SB_BIN] = bin_
    slab[0, _SB_BHN] = bhn
    slab[0, _SB_PQ1B] = pq1b
    slab[0, _SB_PQ2B] = pq2b
    slab[0, _SB_HD1B] = hd1b
    slab[0, _SB_DEC2B] = f(p["dec2_b"])
    slab[0, _SB_REWB] = f(p["rew2_b"])
    slab[0, _SB_CONTB] = f(p["cont2_b"])
    slab[0, _SB_REWW] = f(p["rew2_w"])[:, 0]
    slab[0, _SB_CONTW] = f(p["cont2_w"])[:, 0]

    return {
        "w1": bf(w1f), "w2": bf(w2f), "fcw": bf(fcw),
        "wi": bf(f(p["gru_wi"])), "wh": bf(f(p["gru_wh"])),
        "pq1": bf(pq1), "pq2": bf(pq2), "hd1": bf(hd1),
        "dec2": bf(f(p["dec2_w"])),
        "slab": jnp.asarray(slab, jnp.float32),
    }


# ----------------------------- forward pass -----------------------------
def world_model_forward(kp, obs, hidden_state, action, key):
    bsz = obs.shape[0]
    obs_flat = obs.reshape(bsz, OBS_FLAT)                       # NCHW flatten (matches folded conv1 layout)
    # pre-generated N(0,1) consumed inside the kernel for the reparameterized samples
    # TODO(synk): could be replaced by in-kernel pltpu.prng_seed/stateful_normal to drop one input.
    noise = jax.random.normal(key, (bsz, 2 * STOCH), jnp.float32)   # [prior | posterior]

    recon, stats = _core_call(
        obs_flat, action, hidden_state, noise,
        kp["w1"], kp["w2"], kp["fcw"], kp["wi"], kp["wh"],
        kp["pq1"], kp["pq2"], kp["hd1"], kp["dec2"], kp["slab"])

    # ---- unpack the lane-dense stats slab (XLA glue) ----
    S = STOCH
    prior_mean = stats[:, 0:S]
    post_mean = stats[:, S:2 * S]
    prior_std = stats[:, 2 * S:3 * S]
    post_std = stats[:, 3 * S:4 * S]
    z_prior = stats[:, 4 * S:5 * S]
    z_posterior = stats[:, 5 * S:6 * S]
    h = stats[:, 6 * S:6 * S + DETER]
    reward = stats[:, 256:257]
    continue_prob = stats[:, 257:258]
    reconstructed_obs = recon.reshape(bsz, C, IMG, IMG)

    # torch.distributions objects are returned as (mean, std) tuples.
    return {
        "prior_dist": (prior_mean, prior_std),
        "posterior_dist": (post_mean, post_std),
        "reconstructed_obs": reconstructed_obs,
        "reward": reward,
        "continue_prob": continue_prob,
        "hidden_state": h,
        "z_prior": z_prior,
        "z_posterior": z_posterior,
    }


# ----------------------------- main -----------------------------
if __name__ == "__main__":
    root = jax.random.PRNGKey(0)
    k_param, k_obs, k_h, k_a, k_fwd = jax.random.split(root, 5)

    params = init_params(k_param)
    kparams = pack_params(params)    # one-time repack outside jit

    obs = jax.random.normal(k_obs, (B, C, IMG, IMG), jnp.float32)        # NCHW
    hidden_state = jax.random.normal(k_h, (B, DETER), jnp.float32)
    action = jax.random.normal(k_a, (B, ACT_DIM), jnp.float32)

    out = jax.jit(world_model_forward)(kparams, obs, hidden_state, action, k_fwd)
    jax.block_until_ready(out)

    assert out["reconstructed_obs"].shape == (B, C, IMG, IMG)
    assert out["reward"].shape == (B, 1)
    assert out["continue_prob"].shape == (B, 1)
    assert out["hidden_state"].shape == (B, DETER)
    assert out["prior_dist"][0].shape == (B, STOCH)
    assert out["posterior_dist"][0].shape == (B, STOCH)
    assert bool(jnp.all(jnp.isfinite(out["reconstructed_obs"])))
    assert bool(jnp.all(jnp.isfinite(out["hidden_state"])))
    assert bool(jnp.all(out["posterior_dist"][1] > 0.0))
    assert bool(jnp.all((out["continue_prob"] >= 0.0) & (out["continue_prob"] <= 1.0)))
    print("KERNEL_OK")
</pallas_src>

<mosaic_0001>
module attributes {stable_mosaic.version = 11 : i64} {
  func.func @_core_kernel(%arg0: memref<2x1024xf32, #tpu.memory_space<vmem>>, %arg1: memref<2x6xf32, #tpu.memory_space<vmem>>, %arg2: memref<2x64xf32, #tpu.memory_space<vmem>>, %arg3: memref<2x64xf32, #tpu.memory_space<vmem>>, %arg4: memref<1024x512xbf16, #tpu.memory_space<vmem>>, %arg5: memref<512x256xbf16, #tpu.memory_space<vmem>>, %arg6: memref<256x128xbf16, #tpu.memory_space<vmem>>, %arg7: memref<6x192xbf16, #tpu.memory_space<vmem>>, %arg8: memref<64x192xbf16, #tpu.memory_space<vmem>>, %arg9: memref<192x128xbf16, #tpu.memory_space<vmem>>, %arg10: memref<128x128xbf16, #tpu.memory_space<vmem>>, %arg11: memref<128x256xbf16, #tpu.memory_space<vmem>>, %arg12: memref<128x1024xbf16, #tpu.memory_space<vmem>>, %arg13: memref<1x2944xf32, #tpu.memory_space<vmem>>, %arg14: memref<2x1024xf32, #tpu.memory_space<vmem>>, %arg15: memref<2x384xf32, #tpu.memory_space<vmem>>) attributes {dimension_semantics = [], scalar_prefetch = 0 : i64, scratch_operands = 0 : i64, tpu.core_type = #tpu.core_type<tc>} {
    %c0 = arith.constant 0 : index
    %c0_0 = arith.constant 0 : index
    %0 = vector.load %arg0[%c0, %c0_0] : memref<2x1024xf32, #tpu.memory_space<vmem>>, vector<2x1024xf32>
    %1 = arith.truncf %0 : vector<2x1024xf32> to vector<2x1024xbf16>
    %c0_1 = arith.constant 0 : index
    %c0_2 = arith.constant 0 : index
    %2 = vector.load %arg4[%c0_1, %c0_2] : memref<1024x512xbf16, #tpu.memory_space<vmem>>, vector<1024x512xbf16>
    %cst = arith.constant dense<0.000000e+00> : vector<2x512xf32>
    %3 = tpu.matmul %1, %2, %cst {dimension_numbers = #tpu.dot_dimension_numbers<[1], [0], [0], [1], [0, 0, 1, 1], [], []>} : vector<2x1024xbf16>, vector<1024x512xbf16>, vector<2x512xf32> -> vector<2x512xf32>
    %c0_3 = arith.constant 0 : index
    %c0_4 = arith.constant 0 : index
    %4 = vector.load %arg13[%c0_3, %c0_4] : memref<1x2944xf32, #tpu.memory_space<vmem>>, vector<1x512xf32>
    %5 = vector.broadcast %4 : vector<1x512xf32> to vector<2x512xf32>
    %6 = arith.addf %3, %5 : vector<2x512xf32>
    %cst_5 = arith.constant 0.000000e+00 : f32
    %7 = vector.broadcast %cst_5 : f32 to vector<2x512xf32>
    %8 = arith.maximumf %6, %7 : vector<2x512xf32>
    %9 = arith.truncf %8 : vector<2x512xf32> to vector<2x512xbf16>
    %c0_6 = arith.constant 0 : index
    %c0_7 = arith.constant 0 : index
    %10 = vector.load %arg5[%c0_6, %c0_7] : memref<512x256xbf16, #tpu.memory_space<vmem>>, vector<512x256xbf16>
    %cst_8 = arith.constant dense<0.000000e+00> : vector<2x256xf32>
    %11 = tpu.matmul %9, %10, %cst_8 {dimension_numbers = #tpu.dot_dimension_numbers<[1], [0], [0], [1], [0, 0, 1, 1], [], []>} : vector<2x512xbf16>, vector<512x256xbf16>, vector<2x256xf32> -> vector<2x256xf32>
    %c0_9 = arith.constant 0 : index
    %c512 = arith.constant 512 : index
    %12 = vector.load %arg13[%c0_9, %c512] : memref<1x2944xf32, #tpu.memory_space<vmem>>, vector<1x256xf32>
    %13 = vector.broadcast %12 : vector<1x256xf32> to vector<2x256xf32>
    %14 = arith.addf %11, %13 : vector<2x256xf32>
    %cst_10 = arith.constant 0.000000e+00 : f32
    %15 = vector.broadcast %cst_10 : f32 to vector<2x256xf32>
    %16 = arith.maximumf %14, %15 : vector<2x256xf32>
    %17 = arith.truncf %16 : vector<2x256xf32> to vector<2x256xbf16>
    %c0_11 = arith.constant 0 : index
    %c0_12 = arith.constant 0 : index
    %18 = vector.load %arg6[%c0_11, %c0_12] : memref<256x128xbf16, #tpu.memory_space<vmem>>, vector<256x128xbf16>
    %cst_13 = arith.constant dense<0.000000e+00> : vector<2x128xf32>
    %19 = tpu.matmul %17, %18, %cst_13 {dimension_numbers = #tpu.dot_dimension_numbers<[1], [0], [0], [1], [0, 0, 1, 1], [], []>} : vector<2x256xbf16>, vector<256x128xbf16>, vector<2x128xf32> -> vector<2x128xf32>
    %c0_14 = arith.constant 0 : index
    %c768 = arith.constant 768 : index
    %20 = vector.load %arg13[%c0_14, %c768] : memref<1x2944xf32, #tpu.memory_space<vmem>>, vector<1x128xf32>
    %21 = vector.broadcast %20 : vector<1x128xf32> to vector<2x128xf32>
    %22 = arith.addf %19, %21 : vector<2x128xf32>
    %cst_15 = arith.constant 0.000000e+00 : f32
    %23 = vector.broadcast %cst_15 : f32 to vector<2x128xf32>
    %24 = arith.maximumf %22, %23 : vector<2x128xf32>
    %c0_16 = arith.constant 0 : index
    %c0_17 = arith.constant 0 : index
    %25 = vector.load %arg2[%c0_16, %c0_17] : memref<2x64xf32, #tpu.memory_space<vmem>>, vector<2x64xf32>
    %c0_18 = arith.constant 0 : index
    %c0_19 = arith.constant 0 : index
    %26 = vector.load %arg1[%c0_18, %c0_19] : memref<2x6xf32, #tpu.memory_space<vmem>>, vector<2x6xf32>
    %27 = arith.truncf %26 : vector<2x6xf32> to vector<2x6xbf16>
    %c0_20 = arith.constant 0 : index
    %c0_21 = arith.constant 0 : index
    %28 = vector.load %arg7[%c0_20, %c0_21] : memref<6x192xbf16, #tpu.memory_space<vmem>>, vector<6x192xbf16>
    %cst_22 = arith.constant dense<0.000000e+00> : vector<2x192xf32>
    %29 = tpu.matmul %27, %28, %cst_22 {dimension_numbers = #tpu.dot_dimension_numbers<[1], [0], [0], [1], [0, 0, 1, 1], [], []>} : vector<2x6xbf16>, vector<6x192xbf16>, vector<2x192xf32> -> vector<2x192xf32>
    %30 = arith.truncf %25 : vector<2x64xf32> to vector<2x64xbf16>
    %c0_23 = arith.constant 0 : index
    %c0_24 = arith.constant 0 : index
    %31 = vector.load %arg8[%c0_23, %c0_24] : memref<64x192xbf16, #tpu.memory_space<vmem>>, vector<64x192xbf16>
    %cst_25 = arith.constant dense<0.000000e+00> : vector<2x192xf32>
    %32 = tpu.matmul %30, %31, %cst_25 {dimension_numbers = #tpu.dot_dimension_numbers<[1], [0], [0], [1], [0, 0, 1, 1], [], []>} : vector<2x64xbf16>, vector<64x192xbf16>, vector<2x192xf32> -> vector<2x192xf32>
    %33 = vector.extract_strided_slice %29 {offsets = [0, 0], sizes = [2, 64], strides = [1, 1]} : vector<2x192xf32> to vector<2x64xf32>
    %34 = vector.extract_strided_slice %32 {offsets = [0, 0], sizes = [2, 64], strides = [1, 1]} : vector<2x192xf32> to vector<2x64xf32>
    %35 = arith.addf %33, %34 : vector<2x64xf32>
    %c0_26 = arith.constant 0 : index
    %c896 = arith.constant 896 : index
    %36 = vector.load %arg13[%c0_26, %c896] : memref<1x2944xf32, #tpu.memory_space<vmem>>, vector<1x64xf32>
    %37 = vector.broadcast %36 : vector<1x64xf32> to vector<2x64xf32>
    %38 = arith.addf %35, %37 : vector<2x64xf32>
    %39 = arith.negf %38 : vector<2x64xf32>
    %40 = math.exp %39 : vector<2x64xf32>
    %cst_27 = arith.constant 1.000000e+00 : f32
    %41 = vector.broadcast %cst_27 : f32 to vector<2x64xf32>
    %42 = arith.addf %41, %40 : vector<2x64xf32>
    %43 = arith.divf %41, %42 : vector<2x64xf32>
    %44 = vector.extract_strided_slice %29 {offsets = [0, 64], sizes = [2, 64], strides = [1, 1]} : vector<2x192xf32> to vector<2x64xf32>
    %45 = vector.extract_strided_slice %32 {offsets = [0, 64], sizes = [2, 64], strides = [1, 1]} : vector<2x192xf32> to vector<2x64xf32>
    %46 = arith.addf %44, %45 : vector<2x64xf32>
    %c0_28 = arith.constant 0 : index
    %c960 = arith.constant 960 : index
    %47 = vector.load %arg13[%c0_28, %c960] : memref<1x2944xf32, #tpu.memory_space<vmem>>, vector<1x64xf32>
    %48 = vector.broadcast %47 : vector<1x64xf32> to vector<2x64xf32>
    %49 = arith.addf %46, %48 : vector<2x64xf32>
    %50 = arith.negf %49 : vector<2x64xf32>
    %51 = math.exp %50 : vector<2x64xf32>
    %cst_29 = arith.constant 1.000000e+00 : f32
    %52 = vector.broadcast %cst_29 : f32 to vector<2x64xf32>
    %53 = arith.addf %52, %51 : vector<2x64xf32>
    %54 = arith.divf %52, %53 : vector<2x64xf32>
    %55 = vector.extract_strided_slice %29 {offsets = [0, 128], sizes = [2, 64], strides = [1, 1]} : vector<2x192xf32> to vector<2x64xf32>
    %c0_30 = arith.constant 0 : index
    %c1024 = arith.constant 1024 : index
    %56 = vector.load %arg13[%c0_30, %c1024] : memref<1x2944xf32, #tpu.memory_space<vmem>>, vector<1x64xf32>
    %57 = vector.broadcast %56 : vector<1x64xf32> to vector<2x64xf32>
    %58 = arith.addf %55, %57 : vector<2x64xf32>
    %59 = vector.extract_strided_slice %32 {offsets = [0, 128], sizes = [2, 64], strides = [1, 1]} : vector<2x192xf32> to vector<2x64xf32>
    %c0_31 = arith.constant 0 : index
    %c1088 = arith.constant 1088 : index
    %60 = vector.load %arg13[%c0_31, %c1088] : memref<1x2944xf32, #tpu.memory_space<vmem>>, vector<1x64xf32>
    %61 = vector.broadcast %60 : vector<1x64xf32> to vector<2x64xf32>
    %62 = arith.addf %59, %61 : vector<2x64xf32>
    %63 = arith.mulf %43, %62 : vector<2x64xf32>
    %64 = arith.addf %58, %63 : vector<2x64xf32>
    %65 = math.tanh %64 : vector<2x64xf32>
    %cst_32 = arith.constant 1.000000e+00 : f32
    %66 = vector.broadcast %cst_32 : f32 to vector<2x64xf32>
    %67 = arith.subf %66, %54 : vector<2x64xf32>
    %68 = arith.mulf %67, %65 : vector<2x64xf32>
    %69 = arith.mulf %54, %25 : vector<2x64xf32>
    %70 = arith.addf %68, %69 : vector<2x64xf32>
    %71 = tpu.concatenate %70, %24 in 1 : vector<2x64xf32>, vector<2x128xf32> -> vector<2x192xf32>
    %72 = arith.truncf %71 : vector<2x192xf32> to vector<2x192xbf16>
    %c0_33 = arith.constant 0 : index
    %c0_34 = arith.constant 0 : index
    %73 = vector.load %arg9[%c0_33, %c0_34] : memref<192x128xbf16, #tpu.memory_space<vmem>>, vector<192x128xbf16>
    %cst_35 = arith.constant dense<0.000000e+00> : vector<2x128xf32>
    %74 = tpu.matmul %72, %73, %cst_35 {dimension_numbers = #tpu.dot_dimension_numbers<[1], [0], [0], [1], [0, 0, 1, 1], [], []>} : vector<2x192xbf16>, vector<192x128xbf16>, vector<2x128xf32> -> vector<2x128xf32>
    %c0_36 = arith.constant 0 : index
    %c1152 = arith.constant 1152 : index
    %75 = vector.load %arg13[%c0_36, %c1152] : memref<1x2944xf32, #tpu.memory_space<vmem>>, vector<1x128xf32>
    %76 = vector.broadcast %75 : vector<1x128xf32> to vector<2x128xf32>
    %77 = arith.addf %74, %76 : vector<2x128xf32>
    %cst_37 = arith.constant 0.000000e+00 : f32
    %78 = vector.broadcast %cst_37 : f32 to vector<2x128xf32>
    %79 = arith.maximumf %77, %78 : vector<2x128xf32>
    %80 = arith.truncf %79 : vector<2x128xf32> to vector<2x128xbf16>
    %c0_38 = arith.constant 0 : index
    %c0_39 = arith.constant 0 : index
    %81 = vector.load %arg10[%c0_38, %c0_39] : memref<128x128xbf16, #tpu.memory_space<vmem>>, vector<128x128xbf16>
    %cst_40 = arith.constant dense<0.000000e+00> : vector<2x128xf32>
    %82 = tpu.matmul %80, %81, %cst_40 {dimension_numbers = #tpu.dot_dimension_numbers<[1], [0], [0], [1], [0, 0, 1, 1], [], []>} : vector<2x128xbf16>, vector<128x128xbf16>, vector<2x128xf32> -> vector<2x128xf32>
    %c0_41 = arith.constant 0 : index
    %c1280 = arith.constant 1280 : index
    %83 = vector.load %arg13[%c0_41, %c1280] : memref<1x2944xf32, #tpu.memory_space<vmem>>, vector<1x128xf32>
    %84 = vector.broadcast %83 : vector<1x128xf32> to vector<2x128xf32>
    %85 = arith.addf %82, %84 : vector<2x128xf32>
    %86 = vector.extract_strided_slice %85 {offsets = [0, 0], sizes = [2, 64], strides = [1, 1]} : vector<2x128xf32> to vector<2x64xf32>
    %87 = vector.extract_strided_slice %85 {offsets = [0, 64], sizes = [2, 64], strides = [1, 1]} : vector<2x128xf32> to vector<2x64xf32>
    %cst_42 = arith.constant 0.000000e+00 : f32
    %88 = vector.broadcast %cst_42 : f32 to vector<2x64xf32>
    %89 = arith.maximumf %87, %88 : vector<2x64xf32>
    %90 = math.absf %87 : vector<2x64xf32>
    %cst_43 = arith.constant 0.000000e+00 : f32
    %91 = vector.broadcast %cst_43 : f32 to vector<2x64xf32>
    %92 = arith.subf %91, %90 : vector<2x64xf32>
    %93 = math.exp %92 : vector<2x64xf32>
    %cst_44 = arith.constant 1.000000e+00 : f32
    %94 = vector.broadcast %cst_44 : f32 to vector<2x64xf32>
    %95 = arith.addf %94, %93 : vector<2x64xf32>
    %96 = math.log %95 : vector<2x64xf32>
    %97 = arith.addf %89, %96 : vector<2x64xf32>
    %cst_45 = arith.constant 1.000000e-01 : f32
    %98 = vector.broadcast %cst_45 : f32 to vector<2x64xf32>
    %99 = arith.addf %97, %98 : vector<2x64xf32>
    %c0_46 = arith.constant 0 : index
    %c0_47 = arith.constant 0 : index
    %100 = vector.load %arg3[%c0_46, %c0_47] : memref<2x64xf32, #tpu.memory_space<vmem>>, vector<2x64xf32>
    %101 = arith.mulf %99, %100 : vector<2x64xf32>
    %102 = arith.addf %86, %101 : vector<2x64xf32>
    %103 = tpu.concatenate %102, %70 in 1 : vector<2x64xf32>, vector<2x64xf32> -> vector<2x128xf32>
    %104 = tpu.concatenate %86, %99 in 1 : vector<2x64xf32>, vector<2x64xf32> -> vector<2x128xf32>
    %c0_48 = arith.constant 0 : index
    %c0_49 = arith.constant 0 : index
    %105 = vector.load %arg15[%c0_48, %c0_49] : memref<2x384xf32, #tpu.memory_space<vmem>>, vector<2x128xf32>
    tpu.vector_store %arg15[%c0_48, %c0_49], %104 {strides = array<i32>} : memref<2x384xf32, #tpu.memory_space<vmem>>, vector<2x128xf32>,
    %c0_50 = arith.constant 0 : index
    %c128 = arith.constant 128 : index
    %106 = vector.load %arg15[%c0_50, %c128] : memref<2x384xf32, #tpu.memory_space<vmem>>, vector<2x128xf32>
    tpu.vector_store %arg15[%c0_50, %c128], %103 {strides = array<i32>} : memref<2x384xf32, #tpu.memory_space<vmem>>, vector<2x128xf32>,
    %107 = arith.truncf %103 : vector<2x128xf32> to vector<2x128xbf16>
    %c0_51 = arith.constant 0 : index
    %c0_52 = arith.constant 0 : index
    %108 = vector.load %arg11[%c0_51, %c0_52] : memref<128x256xbf16, #tpu.memory_space<vmem>>, vector<128x256xbf16>
    %cst_53 = arith.constant dense<0.000000e+00> : vector<2x256xf32>
    %109 = tpu.matmul %107, %108, %cst_53 {dimension_numbers = #tpu.dot_dimension_numbers<[1], [0], [0], [1], [0, 0, 1, 1], [], []>} : vector<2x128xbf16>, vector<128x256xbf16>, vector<2x256xf32> -> vector<2x256xf32>
    %c0_54 = arith.constant 0 : index
    %c1408 = arith.constant 1408 : index
    %110 = vector.load %arg13[%c0_54, %c1408] : memref<1x2944xf32, #tpu.memory_space<vmem>>, vector<1x256xf32>
    %111 = vector.broadcast %110 : vector<1x256xf32> to vector<2x256xf32>
    %112 = arith.addf %109, %111 : vector<2x256xf32>
    %cst_55 = arith.constant 0.000000e+00 : f32
    %113 = vector.broadcast %cst_55 : f32 to vector<2x256xf32>
    %114 = arith.maximumf %112, %113 : vector<2x256xf32>
    %115 = vector.extract_strided_slice %114 {offsets = [0, 0], sizes = [2, 128], strides = [1, 1]} : vector<2x256xf32> to vector<2x128xf32>
    %116 = arith.truncf %115 : vector<2x128xf32> to vector<2x128xbf16>
    %c0_56 = arith.constant 0 : index
    %c0_57 = arith.constant 0 : index
    %117 = vector.load %arg12[%c0_56, %c0_57] : memref<128x1024xbf16, #tpu.memory_space<vmem>>, vector<128x1024xbf16>
    %cst_58 = arith.constant dense<0.000000e+00> : vector<2x1024xf32>
    %118 = tpu.matmul %116, %117, %cst_58 {dimension_numbers = #tpu.dot_dimension_numbers<[1], [0], [0], [1], [0, 0, 1, 1], [], []>} : vector<2x128xbf16>, vector<128x1024xbf16>, vector<2x1024xf32> -> vector<2x1024xf32>
    %c0_59 = arith.constant 0 : index
    %c1664 = arith.constant 1664 : index
    %119 = vector.load %arg13[%c0_59, %c1664] : memref<1x2944xf32, #tpu.memory_space<vmem>>, vector<1x1024xf32>
    %120 = vector.broadcast %119 : vector<1x1024xf32> to vector<2x1024xf32>
    %121 = arith.addf %118, %120 : vector<2x1024xf32>
    %c0_60 = arith.constant 0 : index
    %c0_61 = arith.constant 0 : index
    %122 = vector.load %arg14[%c0_60, %c0_61] : memref<2x1024xf32, #tpu.memory_space<vmem>>, vector<2x1024xf32>
    tpu.vector_store %arg14[%c0_60, %c0_61], %121 {strides = array<i32>} : memref<2x1024xf32, #tpu.memory_space<vmem>>, vector<2x1024xf32>,
    %123 = vector.extract_strided_slice %114 {offsets = [0, 128], sizes = [2, 64], strides = [1, 1]} : vector<2x256xf32> to vector<2x64xf32>
    %c0_62 = arith.constant 0 : index
    %c2816 = arith.constant 2816 : index
    %124 = vector.load %arg13[%c0_62, %c2816] : memref<1x2944xf32, #tpu.memory_space<vmem>>, vector<1x64xf32>
    %125 = vector.broadcast %124 : vector<1x64xf32> to vector<2x64xf32>
    %126 = arith.mulf %123, %125 : vector<2x64xf32>
    %cst_63 = arith.constant dense<0.000000e+00> : vector<2xf32>
    %127 = vector.multi_reduction <add>, %126, %cst_63 [1] : vector<2x64xf32> to vector<2xf32>
    %128 = vector.shape_cast %127 : vector<2xf32> to vector<2x1xf32>
    %c0_64 = arith.constant 0 : index
    %c2688 = arith.constant 2688 : index
    %129 = vector.load %arg13[%c0_64, %c2688] : memref<1x2944xf32, #tpu.memory_space<vmem>>, vector<1x1xf32>
    %130 = vector.broadcast %129 : vector<1x1xf32> to vector<2x1xf32>
    %131 = arith.addf %128, %130 : vector<2x1xf32>
    %132 = vector.extract_strided_slice %114 {offsets = [0, 192], sizes = [2, 64], strides = [1, 1]} : vector<2x256xf32> to vector<2x64xf32>
    %c0_65 = arith.constant 0 : index
    %c2880 = arith.constant 2880 : index
    %133 = vector.load %arg13[%c0_65, %c2880] : memref<1x2944xf32, #tpu.memory_space<vmem>>, vector<1x64xf32>
    %134 = vector.broadcast %133 : vector<1x64xf32> to vector<2x64xf32>
    %135 = arith.mulf %132, %134 : vector<2x64xf32>
    %cst_66 = arith.constant dense<0.000000e+00> : vector<2xf32>
    %136 = vector.multi_reduction <add>, %135, %cst_66 [1] : vector<2x64xf32> to vector<2xf32>
    %137 = vector.shape_cast %136 : vector<2xf32> to vector<2x1xf32>
    %c0_67 = arith.constant 0 : index
    %c2689 = arith.constant 2689 : index
    %138 = vector.load %arg13[%c0_67, %c2689] : memref<1x2944xf32, #tpu.memory_space<vmem>>, vector<1x1xf32>
    %139 = vector.broadcast %138 : vector<1x1xf32> to vector<2x1xf32>
    %140 = arith.addf %137, %139 : vector<2x1xf32>
    %141 = arith.negf %140 : vector<2x1xf32>
    %142 = math.exp %141 : vector<2x1xf32>
    %cst_68 = arith.constant 1.000000e+00 : f32
    %143 = vector.broadcast %cst_68 : f32 to vector<2x1xf32>
    %144 = arith.addf %143, %142 : vector<2x1xf32>
    %145 = arith.divf %143, %144 : vector<2x1xf32>
    %146 = tpu.iota {dimensions = array<i32: 1>} : vector<2x128xi32>
    %c0_i32 = arith.constant 0 : i32
    %147 = vector.broadcast %c0_i32 : i32 to vector<2x128xi32>
    %148 = arith.cmpi eq, %146, %147 : vector<2x128xi32>
    %149 = vector.shape_cast %131 : vector<2x1xf32> to vector<2x1xf32>
    %150 = vector.broadcast %149 : vector<2x1xf32> to vector<2x128xf32>
    %c1_i32 = arith.constant 1 : i32
    %151 = vector.broadcast %c1_i32 : i32 to vector<2x128xi32>
    %152 = arith.cmpi eq, %146, %151 : vector<2x128xi32>
    %153 = vector.shape_cast %145 : vector<2x1xf32> to vector<2x1xf32>
    %154 = vector.broadcast %153 : vector<2x1xf32> to vector<2x128xf32>
    %cst_69 = arith.constant 0.000000e+00 : f32
    %155 = vector.broadcast %cst_69 : f32 to vector<2x128xf32>
    %156 = arith.select %152, %154, %155 : vector<2x128xi1>, vector<2x128xf32>
    %157 = arith.select %148, %150, %156 : vector<2x128xi1>, vector<2x128xf32>
    %c0_70 = arith.constant 0 : index
    %c256 = arith.constant 256 : index
    %158 = vector.load %arg15[%c0_70, %c256] : memref<2x384xf32, #tpu.memory_space<vmem>>, vector<2x128xf32>
    tpu.vector_store %arg15[%c0_70, %c256], %157 {strides = array<i32>} : memref<2x384xf32, #tpu.memory_space<vmem>>, vector<2x128xf32>,
    return
  }
}

</mosaic_0001>

<bundles_post_ra>
// kernel: world_model_forward.1
= control target key start
LH: loop header
LB: loop body
LE: loop exit
PB: predicated region body
PF: predicated region fallthrough
CT: control target
= control target key end

     0   :  { %21 = vsyncpa [#allocation3], 0  ;;  %s5856_s0 = inlined_call_operand.vmem [shape: f32[2,1024], index: 0, kind: input, shape index: {}]   ;;  %s5857_s1 = inlined_call_operand.hbm [shape: f32[2,6], index: 1, kind: input, shape index: {}]   ;;  %s5858_s2 = inlined_call_operand.hbm [shape: f32[2,64], index: 2, kind: input, shape index: {}]   ;;  %s5859_s3 = inlined_call_operand.vmem [shape: f32[2,64], index: 3, kind: input, shape index: {}]   ;;  %s5860_s4 = inlined_call_operand.hbm [shape: bf16[1024,512], index: 4, kind: input, shape index: {}]   ;;  %s5861_s5 = inlined_call_operand.hbm [shape: bf16[512,256], index: 5, kind: input, shape index: {}]   ;;  %s5862_s6 = inlined_call_operand.vmem [shape: bf16[256,128], index: 6, kind: input, shape index: {}]   ;;  %s5863_s7 = inlined_call_operand.hbm [shape: bf16[6,192], index: 7, kind: input, shape index: {}]   ;;  %s5864_s8 = inlined_call_operand.hbm [shape: bf16[64,192], index: 8, kind: input, shape index: {}]   ;;  %s5865_s9 = inlined_call_operand.hbm [shape: bf16[192,128], index: 9, kind: input, shape index: {}]   ;;  %s5866_s10 = inlined_call_operand.vmem [shape: bf16[128,128], index: 10, kind: input, shape index: {}]   ;;  %s5867_s11 = inlined_call_operand.hbm [shape: bf16[128,256], index: 11, kind: input, shape index: {}]   ;;  %s5868_s12 = inlined_call_operand.hbm [shape: bf16[128,1024], index: 12, kind: input, shape index: {}]   ;;  %s5869_s13 = inlined_call_operand.hbm [shape: f32[1,2944], index: 13, kind: input, shape index: {}]   ;;  %s5870_s14 = inlined_call_operand.vmem [shape: f32[2,1024], index: 14, kind: output, shape index: {0}]   ;;  %s5871_s15 = inlined_call_operand.vmem [shape: f32[2,384], index: 15, kind: output, shape index: {1}]  }
   0x1   :  { %22 = vsyncpa [#allocation5], 0 }
   0x2   :  { %23 = vsyncpa [#allocation8], 0 }
   0x3   :  { %24 = vsyncpa [#allocation11], 0 }
   0x4   :  { %25 = vsyncpa [#allocation14], 0 }
   0x5   :  { %26 = vsyncpa [#allocation17], 0  ;;  %s5452_s18 = smov [#allocation4]   ;;  %s5453_s20 = smov [#allocation7]  }
   0x6   :  { %s45_s19 = sshll.u32 %s5452_s18, 4  ;;  %s68_s21 = sshll.u32 %s5453_s20, 4  ;;  %s46_s19 = int_to_ptr.vmem [resolvable:$true] %s45_s19  ;;  %s69_s21 = int_to_ptr.vmem [resolvable:$true] %s68_s21 }
   0x7   :  { %s5248_s22 = scalar_lea.vmem %s46_s19, 32  ;;  %p5253_p1 = scmp.lt.s32.totalorder %s46_s19, %s46_s19 }
   0x8   :  { %p5249_p0 = scmp.ne.s32.totalorder %s46_s19, %s5248_s22  ;;  %p5254_p2 = scmp.lt.s32.totalorder %s5248_s22, %s5248_s22 }
   0xa   :  { %p5255_p3 = por %p5254_p2, %p5253_p1 }
   0xc   :  { %p5256_p4 = pnand %p5255_p3, %p5249_p0 }
   0xe   :  { %5259 = shalt.err (!%p5256_p4)
}
   0xf   :  { %48 = dma.hbm_to_vmem [thread:$0]  %s5858_s2, 32, %s46_s19, [#allocation5]  }
  0x10   :  { %s5268_s25 = scalar_lea.vmem %s69_s21, 8192  ;;  %p5273_p6 = scmp.lt.s32.totalorder %s69_s21, %s69_s21 }
  0x11   :  { %p5269_p5 = scmp.ne.s32.totalorder %s69_s21, %s5268_s25  ;;  %p5274_p7 = scmp.lt.s32.totalorder %s5268_s25, %s5268_s25 }
  0x13   :  { %p5275_p8 = por %p5274_p7, %p5273_p6 }
  0x15   :  { %p5276_p9 = pnand %p5275_p8, %p5269_p5 }
  0x17   :  { %5279 = shalt.err (!%p5276_p9)
}
  0x18   :  { %s5454_s26 = smov 128   ;;  %s5455_s27 = smov 8  }
  0x19   :  { %74 = dma.hbm_to_vmem [thread:$0]  %s5861_s5, 8192, %s69_s21, [#allocation8], %s5454_s26, %s5454_s26, %s5455_s27  }
  0x1a   :  { %s5456_s30 = smov [#allocation10]   ;;  %s5457_s17 = smov [#allocation13]  }
  0x1b   :  { %s92_s16 = sshll.u32 %s5456_s30, 4  ;;  %s118_s18 = sshll.u32 %s5457_s17, 4  ;;  %s93_s16 = int_to_ptr.vmem [resolvable:$true] %s92_s16  ;;  %s119_s18 = int_to_ptr.vmem [resolvable:$true] %s118_s18 }
  0x1c   :  { %s5288_s2 = scalar_lea.vmem %s93_s16, 1024  ;;  %p5293_p11 = scmp.lt.s32.totalorder %s93_s16, %s93_s16 }
  0x1d   :  { %p5289_p10 = scmp.ne.s32.totalorder %s93_s16, %s5288_s2  ;;  %p5294_p12 = scmp.lt.s32.totalorder %s5288_s2, %s5288_s2 }
  0x1f   :  { %p5295_p13 = por %p5294_p12, %p5293_p11 }
  0x21   :  { %p5296_p0 = pnand %p5295_p13, %p5289_p10 }
  0x23   :  { %5299 = shalt.err (!%p5296_p0)
}
  0x24   :  { %98 = dma.hbm_to_vmem [thread:$0]  %s5864_s8, 1024, %s93_s16, [#allocation11], %s5454_s26, %s5454_s26, %s5455_s27  }
  0x25   :  { %s5308_s22 = scalar_lea.vmem %s119_s18, 2048  ;;  %p5313_p2 = scmp.lt.s32.totalorder %s119_s18, %s119_s18 }
  0x26   :  { %p5309_p1 = scmp.ne.s32.totalorder %s119_s18, %s5308_s22  ;;  %p5314_p3 = scmp.lt.s32.totalorder %s5308_s22, %s5308_s22 }
  0x28   :  { %p5315_p4 = por %p5314_p3, %p5313_p2 }
  0x2a   :  { %p5316_p5 = pnand %p5315_p4, %p5309_p1 }
  0x2c   :  { %5319 = shalt.err (!%p5316_p5)
}
  0x2d   :  { %124 = dma.hbm_to_vmem [thread:$0]  %s5867_s11, 2048, %s119_s18, [#allocation14], %s5454_s26, %s5454_s26, %s5455_s27  }
  0x2e   :  { %s5458_s23 = smov [#allocation2]   ;;  %s5459_s25 = smov [#allocation6]  }
  0x2f   :  { %s35_s24 = sshll.u32 %s5458_s23, 4  ;;  %s56_s28 = sshll.u32 %s5459_s25, 4  ;;  %s36_s24 = int_to_ptr.vmem [resolvable:$true] %s35_s24  ;;  %s57_s28 = int_to_ptr.vmem [resolvable:$true] %s56_s28 }
  0x30   :  { %s5328_s29 = scalar_lea.vmem %s36_s24, 32  ;;  %p5333_p7 = scmp.lt.s32.totalorder %s36_s24, %s36_s24 }
  0x31   :  { %p5329_p6 = scmp.ne.s32.totalorder %s36_s24, %s5328_s29  ;;  %p5334_p8 = scmp.lt.s32.totalorder %s5328_s29, %s5328_s29 }
  0x33   :  { %p5335_p9 = por %p5334_p8, %p5333_p7 }
  0x35   :  { %p5336_p10 = pnand %p5335_p9, %p5329_p6 }
  0x37   :  { %5339 = shalt.err (!%p5336_p10)
}
  0x38   :  { %38 = dma.hbm_to_vmem [thread:$0]  %s5857_s1, 32, %s36_s24, [#allocation3]  }
  0x39   :  { %s5348_s16 = scalar_lea.vmem %s57_s28, 32768  ;;  %p5353_p12 = scmp.lt.s32.totalorder %s57_s28, %s57_s28 }
  0x3a   :  { %p5349_p11 = scmp.ne.s32.totalorder %s57_s28, %s5348_s16  ;;  %p5354_p13 = scmp.lt.s32.totalorder %s5348_s16, %s5348_s16 }
  0x3c   :  { %p5355_p0 = por %p5354_p13, %p5353_p12 }
  0x3e   :  { %p5356_p1 = pnand %p5355_p0, %p5349_p11 }
  0x40   :  { %5359 = shalt.err (!%p5356_p1)
}
  0x41   :  { %s5460_s11 = smov 256   ;;  %s5461_s26 = smov 16  }
  0x42   :  { %62 = dma.hbm_to_vmem [thread:$0]  %s5860_s4, 32768, %s57_s28, [#allocation5], %s5460_s11, %s5460_s11, %s5461_s26  }
  0x43   :  { %s5462_s18 = smov [#allocation9]   ;;  %s5463_s19 = smov [#allocation12]  }
  0x44   :  { %s83_s2 = sshll.u32 %s5462_s18, 4  ;;  %s104_s20 = sshll.u32 %s5463_s19, 4  ;;  %s84_s2 = int_to_ptr.vmem [resolvable:$true] %s83_s2  ;;  %s105_s20 = int_to_ptr.vmem [resolvable:$true] %s104_s20 }
  0x45   :  { %s5368_s1 = scalar_lea.vmem %s84_s2, 128  ;;  %p5373_p3 = scmp.lt.s32.totalorder %s84_s2, %s84_s2 }
  0x46   :  { %p5369_p2 = scmp.ne.s32.totalorder %s84_s2, %s5368_s1  ;;  %p5374_p4 = scmp.lt.s32.totalorder %s5368_s1, %s5368_s1 }
  0x48   :  { %p5375_p5 = por %p5374_p4, %p5373_p3 }
  0x4a   :  { %p5376_p6 = pnand %p5375_p5, %p5369_p2 }
  0x4c   :  { %5379 = shalt.err (!%p5376_p6)
}
  0x4d   :  { %86 = dma.hbm_to_vmem [thread:$0]  %s5863_s7, 128, %s84_s2, [#allocation8]  }
  0x4e   :  { %s5388_s21 = scalar_lea.vmem %s105_s20, 1536  ;;  %p5393_p8 = scmp.lt.s32.totalorder %s105_s20, %s105_s20 }
  0x4f   :  { %p5389_p7 = scmp.ne.s32.totalorder %s105_s20, %s5388_s21  ;;  %p5394_p9 = scmp.lt.s32.totalorder %s5388_s21, %s5388_s21 }
  0x51   :  { %p5395_p10 = por %p5394_p9, %p5393_p8 }
  0x53   :  { %p5396_p11 = pnand %p5395_p10, %p5389_p7 }
  0x55   :  { %5399 = shalt.err (!%p5396_p11)
}
  0x56   :  { %s5464_s4 = smov 64   ;;  %s5465_s23 = smov 4  }
  0x57   :  { %110 = dma.hbm_to_vmem [thread:$0]  %s5865_s9, 1536, %s105_s20, [#allocation11], %s5464_s4, %s5464_s4, %s5465_s23  }
  0x58   :  { %s5466_s28 = smov [#allocation15]  }
  0x59   :  { %s130_s29 = sshll.u32 %s5466_s28, 4  ;;  %s131_s29 = int_to_ptr.vmem [resolvable:$true] %s130_s29 }
  0x5a   :  { %s5408_s8 = scalar_lea.vmem %s131_s29, 8192  ;;  %p5413_p13 = scmp.lt.s32.totalorder %s131_s29, %s131_s29 }
  0x5b   :  { %p5409_p12 = scmp.ne.s32.totalorder %s131_s29, %s5408_s8  ;;  %p5414_p0 = scmp.lt.s32.totalorder %s5408_s8, %s5408_s8 }
  0x5d   :  { %p5415_p1 = por %p5414_p0, %p5413_p13 }
  0x5f   :  { %p5416_p2 = pnand %p5415_p1, %p5409_p12 }
  0x61   :  { %5419 = shalt.err (!%p5416_p2)
}
  0x62   :  { %s5467_s7 = smov 512   ;;  %s5468_s30 = smov 32  }
  0x63   :  { %136 = dma.hbm_to_vmem [thread:$0]  %s5868_s12, 8192, %s131_s29, [#allocation14], %s5467_s7, %s5467_s7, %s5468_s30  }
  0x64   :  { %s5469_s26 = smov [#allocation16]  }
  0x65   :  { %s143_s27 = sshll.u32 %s5469_s26, 4  ;;  %s144_s27 = int_to_ptr.vmem [resolvable:$true] %s143_s27 }
  0x66   :  { %s5428_s9 = scalar_lea.vmem %s144_s27, 368  ;;  %s5432_s17 = scalar_lea.vmem %s144_s27, 384 }
  0x67   :  { %p5429_p3 = scmp.ne.s32.totalorder %s144_s27, %s5428_s9  ;;  %p5433_p4 = scmp.lt.s32.totalorder %s144_s27, %s144_s27 }
  0x68   :  { %p5434_p5 = scmp.lt.s32.totalorder %s5432_s17, %s5428_s9 }
  0x6a   :  { %p5435_p6 = por %p5434_p5, %p5433_p4 }
  0x6c   :  { %p5436_p7 = pnand %p5435_p6, %p5429_p3 }
  0x6e   :  { %5439 = shalt.err (!%p5436_p7)
}
  0x6f   :  { %146 = dma.hbm_to_vmem [thread:$0]  %s5869_s13, 368, %s144_s27, [#allocation17]  }
  0x70   :  { %5440 = dma.done.wait [#allocation3], 32  }
  0x71   :  { %5441 = vsyncadd [#allocation3], 4294967264 }
  0x72   :  { %5442 = dma.done.wait [#allocation5], 32800  }
  0x73   :  { %5443 = vsyncadd [#allocation5], 4294934496 }
  0x74   :  { %5444 = dma.done.wait [#allocation8], 8320  }
  0x75   :  { %5445 = vsyncadd [#allocation8], 4294958976 }
  0x76   :  { %5446 = dma.done.wait [#allocation11], 2560  }
  0x77   :  { %5447 = vsyncadd [#allocation11], 4294964736 }
  0x78   :  { %5448 = dma.done.wait [#allocation14], 10240  }
  0x79   :  { %5449 = vsyncadd [#allocation14], 4294957056 }
  0x7a   :  { %5450 = dma.done.wait [#allocation17], 368  }
  0x7b   :  { %5451 = vsyncadd [#allocation17], 4294966928  ;;  %v4670_v0 = vld [vmem:[#allocation6 + $0xe4] ss:$16 sps:$4 sm:$0xff]   ;;  %v4674_v2 = vld [vmem:[#allocation6 + $0xe0] ss:$16 sps:$4 sm:$0xff]   ;;  %v186_v38 = vlaneseq }
  0x7c   :  { %v4672_v1 = vld [vmem:[#allocation6 + $0x2e4] ss:$16 sps:$4 sm:$0xff]   ;;  %1790 = vmatprep.subr.bf16.mxu0 %v4670_v0  ;;  %v4675_v3 = vld [vmem:[#allocation6 + $0x2e0] ss:$16 sps:$4 sm:$0xff]   ;;  %v5470_v36 = vmov 1983009808  }
  0x7d   :  { %1831 = vmatprep.subr.bf16.mxu1 %v4672_v1  ;;  %v4676_v4 = vld [vmem:[#allocation6 + $0xc4] ss:$16 sps:$4 sm:$0xff]   ;;  %1791 = vmatpush1.bf16.msra.mxu0 %v4674_v2  ;;  %v4680_v6 = vld [vmem:[#allocation6 + $0xc0] ss:$16 sps:$4 sm:$0xff]   ;;  %v184_v37 = vunpack.c.l.s4 %v5470_v36  ;;  %v5588_v43 = vshrl.u32 %v186_v38, 7  ;;  %vm2797_vm0 = vcmask 1042432  }
  0x7e   :  { %1832 = vmatpush1.bf16.msra.mxu1 %v4675_v3  ;;  %v4678_v5 = vld [vmem:[#allocation6 + $0x2c4] ss:$16 sps:$4 sm:$0xff]   ;;  %1792 = vmatprep.subr.bf16.mxu0 %v4676_v4  ;;  %v4681_v7 = vld [vmem:[#allocation6 + $0x2c0] ss:$16 sps:$4 sm:$0xff]   ;;  %vm2793_vm1 = vcmask 48128   ;;  %vm2894_vm2 = vcmask 523264  }
  0x7f   :  { %1833 = vmatprep.subr.bf16.mxu1 %v4678_v5  ;;  %v4682_v8 = vld [vmem:[#allocation6 + $0xa4] ss:$16 sps:$4 sm:$0xff]   ;;  %v4686_v10 = vld [vmem:[#allocation6 + $0xa0] ss:$16 sps:$4 sm:$0xff]   ;;  %v185_v42 = vunpack.c.0.s8 %v184_v37  ;;  %vm5473_vm3 = vmmov 0   ;;  %vm4073_vm4 = vcmask 517120  }
  0x80   :  { %v4684_v9 = vld [vmem:[#allocation6 + $0x2a4] ss:$16 sps:$4 sm:$0xff]   ;;  %v4687_v11 = vld [vmem:[#allocation6 + $0x2a0] ss:$16 sps:$4 sm:$0xff]  }
  0x81   :  { %1793 = vmatpush1.bf16.msra.mxu0 %v4680_v6  ;;  %v4688_v12 = vld [vmem:[#allocation6 + $0x84] ss:$16 sps:$4 sm:$0xff]   ;;  %v4692_v14 = vld [vmem:[#allocation6 + $0x80] ss:$16 sps:$4 sm:$0xff]   ;;  %v5591_v49 = vsub.s32 %v185_v42, %v5588_v43 }
  0x82   :  { %1834 = vmatpush1.bf16.msra.mxu1 %v4681_v7  ;;  %1794 = vmatprep.subr.bf16.mxu0 %v4682_v8  ;;  %v4690_v13 = vld [vmem:[#allocation6 + $0x284] ss:$16 sps:$4 sm:$0xff]   ;;  %v4693_v15 = vld [vmem:[#allocation6 + $0x280] ss:$16 sps:$4 sm:$0xff]  }
  0x83   :  { %1835 = vmatprep.subr.bf16.mxu1 %v4684_v9  ;;  %v4694_v16 = vld [vmem:[#allocation6 + $0x64] ss:$16 sps:$4 sm:$0xff]   ;;  %v4698_v18 = vld [vmem:[#allocation6 + $0x60] ss:$16 sps:$4 sm:$0xff]  }
  0x84   :  { %v4696_v17 = vld [vmem:[#allocation6 + $0x264] ss:$16 sps:$4 sm:$0xff]   ;;  %v4699_v19 = vld [vmem:[#allocation6 + $0x260] ss:$16 sps:$4 sm:$0xff]  }
  0x85   :  { %1795 = vmatpush1.bf16.msra.mxu0 %v4686_v10  ;;  %v4700_v20 = vld [vmem:[#allocation6 + $0x44] ss:$16 sps:$4 sm:$0xff]   ;;  %v4704_v22 = vld [vmem:[#allocation6 + $0x40] ss:$16 sps:$4 sm:$0xff]  }
  0x86   :  { %1836 = vmatpush1.bf16.msra.mxu1 %v4687_v11  ;;  %1796 = vmatprep.subr.bf16.mxu0 %v4688_v12  ;;  %v4702_v21 = vld [vmem:[#allocation6 + $0x244] ss:$16 sps:$4 sm:$0xff]   ;;  %v4705_v23 = vld [vmem:[#allocation6 + $0x240] ss:$16 sps:$4 sm:$0xff]  }
  0x87   :  { %1837 = vmatprep.subr.bf16.mxu1 %v4690_v13  ;;  %v4706_v24 = vld [vmem:[#allocation6 + $0x24] ss:$16 sps:$4 sm:$0xff]   ;;  %v4710_v26 = vld [vmem:[#allocation6 + $0x20] ss:$16 sps:$4 sm:$0xff]  }
  0x88   :  { %v4708_v25 = vld [vmem:[#allocation6 + $0x224] ss:$16 sps:$4 sm:$0xff]   ;;  %v4711_v27 = vld [vmem:[#allocation6 + $0x220] ss:$16 sps:$4 sm:$0xff]  }
  0x89   :  { %1797 = vmatpush1.bf16.msra.mxu0 %v4692_v14  ;;  %v4712_v28 = vld [vmem:[#allocation6 + $0x4] ss:$16 sps:$4 sm:$0xff]   ;;  %v4716_v30 = vld [vmem:[#allocation6] ss:$16 sps:$4 sm:$0xff]  }
  0x8a   :  { %1838 = vmatpush1.bf16.msra.mxu1 %v4693_v15  ;;  %1798 = vmatprep.subr.bf16.mxu0 %v4694_v16  ;;  %v4714_v29 = vld [vmem:[#allocation6 + $0x204] ss:$16 sps:$4 sm:$0xff]   ;;  %v4717_v31 = vld [vmem:[#allocation6 + $0x200] ss:$16 sps:$4 sm:$0xff]  }
  0x8b   :  { %1839 = vmatprep.subr.bf16.mxu1 %v4696_v17  ;;  %v4718_v32 = vld [vmem:[#allocation6 + $0x1e4] ss:$16 sps:$4 sm:$0xff]   ;;  %v4722_v34 = vld [vmem:[#allocation6 + $0x1e0] ss:$16 sps:$4 sm:$0xff]  }
  0x8c   :  { %v4720_v33 = vld [vmem:[#allocation6 + $0x3e4] ss:$16 sps:$4 sm:$0xff]   ;;  %v4723_v35 = vld [vmem:[#allocation6 + $0x3e0] ss:$16 sps:$4 sm:$0xff]  }
  0x8d   :  { %1799 = vmatpush1.bf16.msra.mxu0 %v4698_v18  ;;  %v4724_v39 = vld [vmem:[#allocation6 + $0x1c4] ss:$16 sps:$4 sm:$0xff]   ;;  %v4728_v41 = vld [vmem:[#allocation6 + $0x1c0] ss:$16 sps:$4 sm:$0xff]  }
  0x8e   :  { %1840 = vmatpush1.bf16.msra.mxu1 %v4699_v19  ;;  %1800 = vmatprep.subr.bf16.mxu0 %v4700_v20  ;;  %v4726_v40 = vld [vmem:[#allocation6 + $0x3c4] ss:$16 sps:$4 sm:$0xff]   ;;  %v4729_v44 = vld [vmem:[#allocation6 + $0x3c0] ss:$16 sps:$4 sm:$0xff]  }
  0x8f   :  { %1841 = vmatprep.subr.bf16.mxu1 %v4702_v21  ;;  %v4730_v45 = vld [vmem:[#allocation6 + $0x1a4] ss:$16 sps:$4 sm:$0xff]   ;;  %v4734_v47 = vld [vmem:[#allocation6 + $0x1a0] ss:$16 sps:$4 sm:$0xff]  }
  0x90   :  { %v4732_v46 = vld [vmem:[#allocation6 + $0x3a4] ss:$16 sps:$4 sm:$0xff]   ;;  %v4735_v48 = vld [vmem:[#allocation6 + $0x3a0] ss:$16 sps:$4 sm:$0xff]  }
  0x91   :  { %1801 = vmatpush1.bf16.msra.mxu0 %v4704_v22  ;;  %v4736_v50 = vld [vmem:[#allocation6 + $0x184] ss:$16 sps:$4 sm:$0xff]   ;;  %v178_v52 = vld [vmem:[%s5856_s0] sm:$0xff] }
  0x92   :  { %1842 = vmatpush1.bf16.msra.mxu1 %v4705_v23  ;;  %1802 = vmatprep.subr.bf16.mxu0 %v4706_v24  ;;  %v4738_v51 = vld [vmem:[#allocation6 + $0x384] ss:$16 sps:$4 sm:$0xff]   ;;  %v4740_v53 = vld [vmem:[#allocation6 + $0x180] ss:$16 sps:$4 sm:$0xff]   ;;  %v189_v54 = vrot.slane %v178_v52, %v5591_v49  ;;  %v182_v55 = vcombine.high %v178_v52, %v178_v52 }
  0x93   :  { %1843 = vmatprep.subr.bf16.mxu1 %v4708_v25  ;;  %v4741_v56 = vld [vmem:[#allocation6 + $0x380] ss:$16 sps:$4 sm:$0xff]   ;;  %v4742_v57 = vld [vmem:[#allocation6 + $0x164] ss:$16 sps:$4 sm:$0xff]  }
  0x94   :  { %v4744_v58 = vld [vmem:[#allocation6 + $0x364] ss:$16 sps:$4 sm:$0xff]   ;;  %v197_v59 = vcombine.high %v189_v54, %v189_v54  ;;  %v196_v60 = vrot.slane %v182_v55, %v5591_v49  ;;  %v4746_v61 = vld [vmem:[#allocation6 + $0x160] ss:$16 sps:$4 sm:$0xff]   ;;  %v5604_v16 = vpack.c.bf16 %v189_v54, %v189_v54 }
  0x95   :  { %1803 = vmatpush1.bf16.msra.mxu0 %v4710_v26  ;;  %v4747_v0 = vld [vmem:[#allocation6 + $0x360] ss:$16 sps:$4 sm:$0xff]   ;;  %v4748_v1 = vld [vmem:[#allocation6 + $0x144] ss:$16 sps:$4 sm:$0xff]  }
  0x96   :  { %1844 = vmatpush1.bf16.msra.mxu1 %v4711_v27  ;;  %1804 = vmatprep.subr.bf16.mxu0 %v4712_v28  ;;  %v5598_v62 = vpack.c.bf16 %v197_v59, %v197_v59  ;;  %v198_v63 = vcombine.high %v196_v60, %v196_v60  ;;  %v4750_v2 = vld [vmem:[#allocation6 + $0x344] ss:$16 sps:$4 sm:$0xff]   ;;  %v4752_v4 = vld [vmem:[#allocation6 + $0x140] ss:$16 sps:$4 sm:$0xff]   ;;  %v5606_v17 = vpack.c.bf16 %v196_v60, %v196_v60 }
  0x97   :  { %1845 = vmatprep.subr.bf16.mxu1 %v4714_v29  ;;  %v4753_v5 = vld [vmem:[#allocation6 + $0x340] ss:$16 sps:$4 sm:$0xff]   ;;  %v4754_v6 = vld [vmem:[#allocation6 + $0x124] ss:$16 sps:$4 sm:$0xff]  }
  0x98   :  { %v5600_v3 = vpack.c.bf16 %v198_v63, %v198_v63  ;;  %1822 = vmatprep.mubr.bf16.mxu0 %v5598_v62  ;;  %v4756_v7 = vld [vmem:[#allocation6 + $0x324] ss:$16 sps:$4 sm:$0xff]   ;;  %v4758_v8 = vld [vmem:[#allocation6 + $0x120] ss:$16 sps:$4 sm:$0xff]  }
  0x99   :  { %1805 = vmatpush1.bf16.msra.mxu0 %v4716_v30  ;;  %v4759_v9 = vld [vmem:[#allocation6 + $0x320] ss:$16 sps:$4 sm:$0xff]   ;;  %v4760_v10 = vld [vmem:[#allocation6 + $0x104] ss:$16 sps:$4 sm:$0xff]  }
  0x9a   :  { %1846 = vmatpush1.bf16.msra.mxu1 %v4717_v31  ;;  %1806 = vmatprep.subr.bf16.mxu0 %v4718_v32  ;;  %v4762_v11 = vld [vmem:[#allocation6 + $0x304] ss:$16 sps:$4 sm:$0xff]   ;;  %v4764_v12 = vld [vmem:[#allocation6 + $0x100] ss:$16 sps:$4 sm:$0xff]  }
  0x9b   :  { %1847 = vmatprep.subr.bf16.mxu1 %v4720_v33  ;;  %1863 = vmatprep.mubr.bf16.mxu1 %v5600_v3  ;;  %v4765_v13 = vld [vmem:[#allocation6 + $0x300] ss:$16 sps:$4 sm:$0xff]   ;;  %v4769_v14 = vld [vmem:[#allocation6 + $0x4e4] ss:$16 sps:$4 sm:$0xff]  }
  0x9c   :  { %v4772_v15 = vld [vmem:[#allocation6 + $0x6e4] ss:$16 sps:$4 sm:$0xff]   ;;  %v4767_v18 = vld [vmem:[#allocation6 + $0x4e0] ss:$16 sps:$4 sm:$0xff]  }
  0x9d   :  { %1807 = vmatpush2.bf16.msra.mxu0 %v4722_v34  ;;  %v4770_v19 = vld [vmem:[#allocation6 + $0x6e0] ss:$16 sps:$4 sm:$0xff]   ;;  %v4775_v20 = vld [vmem:[#allocation6 + $0x4c4] ss:$16 sps:$4 sm:$0xff]  }
  0x9e   :  { %1848 = vmatpush2.bf16.msra.mxu1 %v4723_v35  ;;  %1808 = vmatprep.subr.bf16.mxu0 %v4724_v39  ;;  %v4778_v21 = vld [vmem:[#allocation6 + $0x6c4] ss:$16 sps:$4 sm:$0xff]   ;;  %v4773_v22 = vld [vmem:[#allocation6 + $0x4c0] ss:$16 sps:$4 sm:$0xff]  }
  0x9f   :  { %1849 = vmatprep.subr.bf16.mxu1 %v4726_v40  ;;  %v4776_v23 = vld [vmem:[#allocation6 + $0x6c0] ss:$16 sps:$4 sm:$0xff]   ;;  %v4781_v24 = vld [vmem:[#allocation6 + $0x4a4] ss:$16 sps:$4 sm:$0xff]  }
  0xa0   :  { %v4784_v25 = vld [vmem:[#allocation6 + $0x6a4] ss:$16 sps:$4 sm:$0xff]   ;;  %v4779_v26 = vld [vmem:[#allocation6 + $0x4a0] ss:$16 sps:$4 sm:$0xff]  }
  0xa1   :  { %1809 = vmatpush2.bf16.msra.mxu0 %v4728_v41  ;;  %v4782_v27 = vld [vmem:[#allocation6 + $0x6a0] ss:$16 sps:$4 sm:$0xff]   ;;  %v4787_v28 = vld [vmem:[#allocation6 + $0x484] ss:$16 sps:$4 sm:$0xff]  }
  0xa2   :  { %1850 = vmatpush2.bf16.msra.mxu1 %v4729_v44  ;;  %1810 = vmatprep.subr.bf16.mxu0 %v4730_v45  ;;  %v4790_v29 = vld [vmem:[#allocation6 + $0x684] ss:$16 sps:$4 sm:$0xff]   ;;  %v4785_v30 = vld [vmem:[#allocation6 + $0x480] ss:$16 sps:$4 sm:$0xff]  }
  0xa3   :  { %1851 = vmatprep.subr.bf16.mxu1 %v4732_v46  ;;  %v4788_v31 = vld [vmem:[#allocation6 + $0x680] ss:$16 sps:$4 sm:$0xff]   ;;  %v4793_v32 = vld [vmem:[#allocation6 + $0x464] ss:$16 sps:$4 sm:$0xff]  }
  0xa4   :  { %v4796_v33 = vld [vmem:[#allocation6 + $0x664] ss:$16 sps:$4 sm:$0xff]   ;;  %v4791_v34 = vld [vmem:[#allocation6 + $0x460] ss:$16 sps:$4 sm:$0xff]  }
  0xa5   :  { %1811 = vmatpush2.bf16.msra.mxu0 %v4734_v47  ;;  %v4794_v35 = vld [vmem:[#allocation6 + $0x660] ss:$16 sps:$4 sm:$0xff]   ;;  %v4799_v36 = vld [vmem:[#allocation6 + $0x444] ss:$16 sps:$4 sm:$0xff]  }
  0xa6   :  { %1852 = vmatpush2.bf16.msra.mxu1 %v4735_v48  ;;  %1812 = vmatprep.subr.bf16.mxu0 %v4736_v50  ;;  %v4802_v37 = vld [vmem:[#allocation6 + $0x644] ss:$16 sps:$4 sm:$0xff]   ;;  %v4797_v39 = vld [vmem:[#allocation6 + $0x440] ss:$16 sps:$4 sm:$0xff]  }
  0xa7   :  { %1853 = vmatprep.subr.bf16.mxu1 %v4738_v51  ;;  %v4800_v40 = vld [vmem:[#allocation6 + $0x640] ss:$16 sps:$4 sm:$0xff]   ;;  %v4805_v41 = vld [vmem:[#allocation6 + $0x424] ss:$16 sps:$4 sm:$0xff]  }
  0xa8   :  { %v4808_v42 = vld [vmem:[#allocation6 + $0x624] ss:$16 sps:$4 sm:$0xff]   ;;  %v4803_v47 = vld [vmem:[#allocation6 + $0x420] ss:$16 sps:$4 sm:$0xff]  }
  0xa9   :  { %1813 = vmatpush2.bf16.msra.mxu0 %v4740_v53  ;;  %v179_v44 = vld [vmem:[%s5856_s0 + $0x8] sm:$0xff]  ;;  %v4806_v48 = vld [vmem:[#allocation6 + $0x620] ss:$16 sps:$4 sm:$0xff]  }
  0xaa   :  { %1854 = vmatpush2.bf16.msra.mxu1 %v4741_v56  ;;  %1814 = vmatprep.subr.bf16.mxu0 %v4742_v57  ;;  %v5614_v45 = vrot.slane %v179_v44, %v5591_v49  ;;  %v199_v46 = vcombine.high %v179_v44, %v179_v44  ;;  %v4811_v52 = vld [vmem:[#allocation6 + $0x404] ss:$16 sps:$4 sm:$0xff]   ;;  %v4809_v56 = vld [vmem:[#allocation6 + $0x400] ss:$16 sps:$4 sm:$0xff]   ;;  %v4881_v44 = vld [vmem:[#allocation6 + $0x2ac] ss:$16 sps:$4 sm:$0xff]  }
  0xab   :  { %1855 = vmatprep.subr.bf16.mxu1 %v4744_v58  ;;  %v4814_v53 = vld [vmem:[#allocation6 + $0x604] ss:$16 sps:$4 sm:$0xff]   ;;  %v4812_v57 = vld [vmem:[#allocation6 + $0x600] ss:$16 sps:$4 sm:$0xff]  }
  0xac   :  { %v214_v50 = vcombine.high %v5614_v45, %v5614_v45  ;;  %v5619_v51 = vrot.slane %v199_v46, %v5591_v49  ;;  %v4817_v59 = vld [vmem:[#allocation6 + $0x5e4] ss:$16 sps:$4 sm:$0xff]   ;;  %v4818_v63 = vld [vmem:[#allocation6 + $0x7e0] ss:$16 sps:$4 sm:$0xff]   ;;  %v4879_v46 = vld [vmem:[#allocation6 + $0x2a8] ss:$16 sps:$4 sm:$0xff]  }
  0xad   :  { %1815 = vmatpush2.bf16.msra.mxu0 %v4746_v61  ;;  %v4820_v60 = vld [vmem:[#allocation6 + $0x7e4] ss:$16 sps:$4 sm:$0xff]   ;;  %v4815_v61 = vld [vmem:[#allocation6 + $0x5e0] ss:$16 sps:$4 sm:$0xff]  }
  0xae   :  { %1856 = vmatpush2.bf16.msra.mxu1 %v4747_v0  ;;  %1816 = vmatprep.subr.bf16.mxu0 %v4748_v1  ;;  %v5621_v54 = vpack.c.bf16 %v214_v50, %v214_v50  ;;  %v215_v55 = vcombine.high %v5619_v51, %v5619_v51  ;;  %v4823_v0 = vld [vmem:[#allocation6 + $0x5c4] ss:$16 sps:$4 sm:$0xff]   ;;  %v4882_v50 = vld [vmem:[#allocation6 + $0x88] ss:$16 sps:$4 sm:$0xff]  }
  0xaf   :  { %1857 = vmatprep.subr.bf16.mxu1 %v4750_v2  ;;  %v4826_v1 = vld [vmem:[#allocation6 + $0x7c4] ss:$16 sps:$4 sm:$0xff]   ;;  %v4821_v2 = vld [vmem:[#allocation6 + $0x5c0] ss:$16 sps:$4 sm:$0xff]  }
  0xb0   :  { %v5625_v58 = vpack.c.bf16 %v215_v55, %v215_v55  ;;  %v4896_v55 = vld [vmem:[#allocation6 + $0x4c] ss:$16 sps:$4 sm:$0xff]  }
  0xb1   :  { %1817 = vmatpush2.bf16.msra.mxu0 %v4752_v4  ;;  %v4824_v4 = vld [vmem:[#allocation6 + $0x7c0] ss:$16 sps:$4 sm:$0xff]  }
  0xb2   :  { %1858 = vmatpush2.bf16.msra.mxu1 %v4753_v5  ;;  %1818 = vmatprep.subr.bf16.mxu0 %v4754_v6  ;;  %v4829_v5 = vld [vmem:[#allocation6 + $0x5a4] ss:$16 sps:$4 sm:$0xff]  }
  0xb3   :  { %1859 = vmatprep.subr.bf16.mxu1 %v4756_v7  ;;  %v4832_v6 = vld [vmem:[#allocation6 + $0x7a4] ss:$16 sps:$4 sm:$0xff]   ;;  %v4827_v7 = vld [vmem:[#allocation6 + $0x5a0] ss:$16 sps:$4 sm:$0xff]  }
  0xb5   :  { %1819 = vmatpush2.bf16.msra.mxu0 %v4758_v8  ;;  %v4830_v8 = vld [vmem:[#allocation6 + $0x7a0] ss:$16 sps:$4 sm:$0xff]  }
  0xb6   :  { %1860 = vmatpush2.bf16.msra.mxu1 %v4759_v9  ;;  %1820 = vmatprep.subr.bf16.mxu0 %v4760_v10  ;;  %v4835_v9 = vld [vmem:[#allocation6 + $0x584] ss:$16 sps:$4 sm:$0xff]  }
  0xb7   :  { %1861 = vmatprep.subr.bf16.mxu1 %v4762_v11  ;;  %v4838_v10 = vld [vmem:[#allocation6 + $0x784] ss:$16 sps:$4 sm:$0xff]   ;;  %v4833_v11 = vld [vmem:[#allocation6 + $0x580] ss:$16 sps:$4 sm:$0xff]  }
  0xb9   :  { %1821 = vmatpush2.bf16.msra.mxu0 %v4764_v12  ;;  %v4836_v12 = vld [vmem:[#allocation6 + $0x780] ss:$16 sps:$4 sm:$0xff]  }
  0xba   :  { %1862 = vmatpush2.bf16.msra.mxu1 %v4765_v13  ;;  %1872 = vmatprep.subr.bf16.mxu0 %v4769_v14  ;;  %v4841_v13 = vld [vmem:[#allocation6 + $0x564] ss:$16 sps:$4 sm:$0xff]  }
  0xbb   :  { %1913 = vmatprep.subr.bf16.mxu1 %v4772_v15  ;;  %v4844_v14 = vld [vmem:[#allocation6 + $0x764] ss:$16 sps:$4 sm:$0xff]   ;;  %v4839_v15 = vld [vmem:[#allocation6 + $0x560] ss:$16 sps:$4 sm:$0xff]  }
  0xbc   :  { %1823 = vmatmul.mubr.bf16.vlgmr.msra.gmra.mxu0 %v5604_v16 }
  0xbd   :  { %1864 = vmatmul.mubr.bf16.vlgmr.msra.gmra.mxu1 %v5606_v17  ;;  %1873 = vmatpush1.bf16.msra.mxu0 %v4767_v18  ;;  %v4842_v18 = vld [vmem:[#allocation6 + $0x760] ss:$16 sps:$4 sm:$0xff]  }
  0xbe   :  { %1914 = vmatpush1.bf16.msra.mxu1 %v4770_v19  ;;  %1874 = vmatprep.subr.bf16.mxu0 %v4775_v20  ;;  %v4847_v19 = vld [vmem:[#allocation6 + $0x544] ss:$16 sps:$4 sm:$0xff]  }
  0xbf   :  { %1915 = vmatprep.subr.bf16.mxu1 %v4778_v21  ;;  %1904 = vmatprep.mubr.bf16.mxu0 %v5621_v54  ;;  %v4850_v20 = vld [vmem:[#allocation6 + $0x744] ss:$16 sps:$4 sm:$0xff]   ;;  %v4845_v21 = vld [vmem:[#allocation6 + $0x540] ss:$16 sps:$4 sm:$0xff]  }
  0xc0   :  { %1945 = vmatprep.mubr.bf16.mxu1 %v5625_v58 }
  0xc1   :  { %1875 = vmatpush1.bf16.msra.mxu0 %v4773_v22  ;;  %v4848_v22 = vld [vmem:[#allocation6 + $0x740] ss:$16 sps:$4 sm:$0xff]  }
  0xc2   :  { %1916 = vmatpush1.bf16.msra.mxu1 %v4776_v23  ;;  %1876 = vmatprep.subr.bf16.mxu0 %v4781_v24  ;;  %v4853_v23 = vld [vmem:[#allocation6 + $0x524] ss:$16 sps:$4 sm:$0xff]  }
  0xc3   :  { %1917 = vmatprep.subr.bf16.mxu1 %v4784_v25  ;;  %v4856_v24 = vld [vmem:[#allocation6 + $0x724] ss:$16 sps:$4 sm:$0xff]   ;;  %v4851_v25 = vld [vmem:[#allocation6 + $0x520] ss:$16 sps:$4 sm:$0xff]  }
  0xc5   :  { %1877 = vmatpush1.bf16.msra.mxu0 %v4779_v26  ;;  %v4854_v26 = vld [vmem:[#allocation6 + $0x720] ss:$16 sps:$4 sm:$0xff]  }
  0xc6   :  { %1918 = vmatpush1.bf16.msra.mxu1 %v4782_v27  ;;  %1878 = vmatprep.subr.bf16.mxu0 %v4787_v28  ;;  %v4859_v27 = vld [vmem:[#allocation6 + $0x504] ss:$16 sps:$4 sm:$0xff]  }
  0xc7   :  { %1919 = vmatprep.subr.bf16.mxu1 %v4790_v29  ;;  %v4862_v28 = vld [vmem:[#allocation6 + $0x704] ss:$16 sps:$4 sm:$0xff]   ;;  %v4857_v29 = vld [vmem:[#allocation6 + $0x500] ss:$16 sps:$4 sm:$0xff]  }
  0xc9   :  { %1879 = vmatpush1.bf16.msra.mxu0 %v4785_v30  ;;  %v4860_v30 = vld [vmem:[#allocation6 + $0x700] ss:$16 sps:$4 sm:$0xff]  }
  0xca   :  { %1920 = vmatpush1.bf16.msra.mxu1 %v4788_v31  ;;  %1880 = vmatprep.subr.bf16.mxu0 %v4793_v32  ;;  %v4866_v31 = vld [vmem:[#allocation6 + $0xec] ss:$16 sps:$4 sm:$0xff]  }
  0xcb   :  { %1921 = vmatprep.subr.bf16.mxu1 %v4796_v33  ;;  %v4869_v32 = vld [vmem:[#allocation6 + $0x2ec] ss:$16 sps:$4 sm:$0xff]   ;;  %v5631_v33 = vpack.c.bf16 %v5614_v45, %v5614_v45  ;;  %v4876_v45 = vld [vmem:[#allocation6 + $0xa8] ss:$16 sps:$4 sm:$0xff]  }
  0xcd   :  { %1881 = vmatpush1.bf16.msra.mxu0 %v4791_v34  ;;  %v5635_v34 = vpack.c.bf16 %v5619_v51, %v5619_v51  ;;  %v4885_v51 = vld [vmem:[#allocation6 + $0x288] ss:$16 sps:$4 sm:$0xff]  }
  0xce   :  { %1922 = vmatpush1.bf16.msra.mxu1 %v4794_v35  ;;  %1882 = vmatprep.subr.bf16.mxu0 %v4799_v36  ;;  %v4864_v35 = vld [vmem:[#allocation6 + $0xe8] ss:$16 sps:$4 sm:$0xff]  }
  0xcf   :  { %1923 = vmatprep.subr.bf16.mxu1 %v4802_v37  ;;  %v4867_v36 = vld [vmem:[#allocation6 + $0x2e8] ss:$16 sps:$4 sm:$0xff]   ;;  %v4872_v37 = vld [vmem:[#allocation6 + $0xcc] ss:$16 sps:$4 sm:$0xff]  }
  0xd1   :  { %1883 = vmatpush1.bf16.msra.mxu0 %v4797_v39  ;;  %v4875_v39 = vld [vmem:[#allocation6 + $0x2cc] ss:$16 sps:$4 sm:$0xff]  }
  0xd2   :  { %1924 = vmatpush1.bf16.msra.mxu1 %v4800_v40  ;;  %1884 = vmatprep.subr.bf16.mxu0 %v4805_v41  ;;  %v4870_v40 = vld [vmem:[#allocation6 + $0xc8] ss:$16 sps:$4 sm:$0xff]  }
  0xd3   :  { %1925 = vmatprep.subr.bf16.mxu1 %v4808_v42  ;;  %v4873_v41 = vld [vmem:[#allocation6 + $0x2c8] ss:$16 sps:$4 sm:$0xff]   ;;  %v4878_v42 = vld [vmem:[#allocation6 + $0xac] ss:$16 sps:$4 sm:$0xff]  }
  0xd5   :  { %1885 = vmatpush1.bf16.msra.mxu0 %v4803_v47  ;;  %v4884_v47 = vld [vmem:[#allocation6 + $0x8c] ss:$16 sps:$4 sm:$0xff]  }
  0xd6   :  { %1926 = vmatpush1.bf16.msra.mxu1 %v4806_v48  ;;  %1886 = vmatprep.subr.bf16.mxu0 %v4811_v52  ;;  %v4887_v48 = vld [vmem:[#allocation6 + $0x28c] ss:$16 sps:$4 sm:$0xff]  }
  0xd7   :  { %1927 = vmatprep.subr.bf16.mxu1 %v4814_v53  ;;  %v4890_v52 = vld [vmem:[#allocation6 + $0x6c] ss:$16 sps:$4 sm:$0xff]  }
  0xd8   :  { %v4893_v53 = vld [vmem:[#allocation6 + $0x26c] ss:$16 sps:$4 sm:$0xff]  }
  0xd9   :  { %1887 = vmatpush1.bf16.msra.mxu0 %v4809_v56  ;;  %v4899_v56 = vld [vmem:[#allocation6 + $0x24c] ss:$16 sps:$4 sm:$0xff]  }
  0xda   :  { %1928 = vmatpush1.bf16.msra.mxu1 %v4812_v57  ;;  %1888 = vmatprep.subr.bf16.mxu0 %v4817_v59  ;;  %v4894_v57 = vld [vmem:[#allocation6 + $0x48] ss:$16 sps:$4 sm:$0xff]  }
  0xdb   :  { %1929 = vmatprep.subr.bf16.mxu1 %v4820_v60  ;;  %v4897_v59 = vld [vmem:[#allocation6 + $0x248] ss:$16 sps:$4 sm:$0xff]   ;;  %v4902_v60 = vld [vmem:[#allocation6 + $0x2c] ss:$16 sps:$4 sm:$0xff]  }
  0xdd   :  { %1889 = vmatpush2.bf16.msra.mxu0 %v4815_v61  ;;  %v4905_v61 = vld [vmem:[#allocation6 + $0x22c] ss:$16 sps:$4 sm:$0xff]  }
  0xde   :  { %1930 = vmatpush2.bf16.msra.mxu1 %v4818_v63  ;;  %1890 = vmatprep.subr.bf16.mxu0 %v4823_v0  ;;  %v4900_v63 = vld [vmem:[#allocation6 + $0x28] ss:$16 sps:$4 sm:$0xff]  }
  0xdf   :  { %1931 = vmatprep.subr.bf16.mxu1 %v4826_v1  ;;  %v4903_v0 = vld [vmem:[#allocation6 + $0x228] ss:$16 sps:$4 sm:$0xff]   ;;  %v4908_v1 = vld [vmem:[#allocation6 + $0xc] ss:$16 sps:$4 sm:$0xff]  }
  0xe1   :  { %1891 = vmatpush2.bf16.msra.mxu0 %v4821_v2  ;;  %v4911_v2 = vld [vmem:[#allocation6 + $0x20c] ss:$16 sps:$4 sm:$0xff]  }
  0xe2   :  { %1932 = vmatpush2.bf16.msra.mxu1 %v4824_v4  ;;  %1892 = vmatprep.subr.bf16.mxu0 %v4829_v5  ;;  %v4906_v4 = vld [vmem:[#allocation6 + $0x8] ss:$16 sps:$4 sm:$0xff]  }
  0xe3   :  { %1933 = vmatprep.subr.bf16.mxu1 %v4832_v6  ;;  %v4909_v5 = vld [vmem:[#allocation6 + $0x208] ss:$16 sps:$4 sm:$0xff]   ;;  %v4914_v6 = vld [vmem:[#allocation6 + $0x1ec] ss:$16 sps:$4 sm:$0xff]  }
  0xe5   :  { %1893 = vmatpush2.bf16.msra.mxu0 %v4827_v7  ;;  %v4917_v7 = vld [vmem:[#allocation6 + $0x3ec] ss:$16 sps:$4 sm:$0xff]  }
  0xe6   :  { %1934 = vmatpush2.bf16.msra.mxu1 %v4830_v8  ;;  %1894 = vmatprep.subr.bf16.mxu0 %v4835_v9  ;;  %v4912_v8 = vld [vmem:[#allocation6 + $0x1e8] ss:$16 sps:$4 sm:$0xff]  }
  0xe7   :  { %1935 = vmatprep.subr.bf16.mxu1 %v4838_v10  ;;  %v4915_v9 = vld [vmem:[#allocation6 + $0x3e8] ss:$16 sps:$4 sm:$0xff]   ;;  %v4920_v10 = vld [vmem:[#allocation6 + $0x1cc] ss:$16 sps:$4 sm:$0xff]  }
  0xe9   :  { %1895 = vmatpush2.bf16.msra.mxu0 %v4833_v11  ;;  %v4923_v11 = vld [vmem:[#allocation6 + $0x3cc] ss:$16 sps:$4 sm:$0xff]  }
  0xea   :  { %1936 = vmatpush2.bf16.msra.mxu1 %v4836_v12  ;;  %1896 = vmatprep.subr.bf16.mxu0 %v4841_v13  ;;  %v4918_v12 = vld [vmem:[#allocation6 + $0x1c8] ss:$16 sps:$4 sm:$0xff]  }
  0xeb   :  { %1937 = vmatprep.subr.bf16.mxu1 %v4844_v14  ;;  %v4921_v13 = vld [vmem:[#allocation6 + $0x3c8] ss:$16 sps:$4 sm:$0xff]   ;;  %v4926_v14 = vld [vmem:[#allocation6 + $0x1ac] ss:$16 sps:$4 sm:$0xff]  }
  0xed   :  { %1897 = vmatpush2.bf16.msra.mxu0 %v4839_v15  ;;  %v4929_v15 = vld [vmem:[#allocation6 + $0x3ac] ss:$16 sps:$4 sm:$0xff]  }
  0xee   :  { %1938 = vmatpush2.bf16.msra.mxu1 %v4842_v18  ;;  %1898 = vmatprep.subr.bf16.mxu0 %v4847_v19  ;;  %v4924_v18 = vld [vmem:[#allocation6 + $0x1a8] ss:$16 sps:$4 sm:$0xff]  }
  0xef   :  { %1939 = vmatprep.subr.bf16.mxu1 %v4850_v20  ;;  %v4927_v19 = vld [vmem:[#allocation6 + $0x3a8] ss:$16 sps:$4 sm:$0xff]   ;;  %v4932_v20 = vld [vmem:[#allocation6 + $0x18c] ss:$16 sps:$4 sm:$0xff]  }
  0xf1   :  { %1899 = vmatpush2.bf16.msra.mxu0 %v4845_v21  ;;  %v4935_v21 = vld [vmem:[#allocation6 + $0x38c] ss:$16 sps:$4 sm:$0xff]  }
  0xf2   :  { %1940 = vmatpush2.bf16.msra.mxu1 %v4848_v22  ;;  %1900 = vmatprep.subr.bf16.mxu0 %v4853_v23  ;;  %v4930_v22 = vld [vmem:[#allocation6 + $0x188] ss:$16 sps:$4 sm:$0xff]  }
  0xf3   :  { %1941 = vmatprep.subr.bf16.mxu1 %v4856_v24  ;;  %v4933_v23 = vld [vmem:[#allocation6 + $0x388] ss:$16 sps:$4 sm:$0xff]   ;;  %v4938_v24 = vld [vmem:[#allocation6 + $0x16c] ss:$16 sps:$4 sm:$0xff]  }
  0xf5   :  { %1901 = vmatpush2.bf16.msra.mxu0 %v4851_v25  ;;  %v4941_v25 = vld [vmem:[#allocation6 + $0x36c] ss:$16 sps:$4 sm:$0xff]  }
  0xf6   :  { %1942 = vmatpush2.bf16.msra.mxu1 %v4854_v26  ;;  %1902 = vmatprep.subr.bf16.mxu0 %v4859_v27  ;;  %v4936_v26 = vld [vmem:[#allocation6 + $0x168] ss:$16 sps:$4 sm:$0xff]  }
  0xf7   :  { %1943 = vmatprep.subr.bf16.mxu1 %v4862_v28  ;;  %v4939_v27 = vld [vmem:[#allocation6 + $0x368] ss:$16 sps:$4 sm:$0xff]   ;;  %v4944_v28 = vld [vmem:[#allocation6 + $0x14c] ss:$16 sps:$4 sm:$0xff]  }
  0xf9   :  { %1903 = vmatpush2.bf16.msra.mxu0 %v4857_v29  ;;  %v4947_v29 = vld [vmem:[#allocation6 + $0x34c] ss:$16 sps:$4 sm:$0xff]  }
  0xfa   :  { %1944 = vmatpush2.bf16.msra.mxu1 %v4860_v30  ;;  %1954 = vmatprep.subr.bf16.mxu0 %v4866_v31  ;;  %v4942_v30 = vld [vmem:[#allocation6 + $0x148] ss:$16 sps:$4 sm:$0xff]  }
  0xfb   :  { %1995 = vmatprep.subr.bf16.mxu1 %v4869_v32  ;;  %v4945_v31 = vld [vmem:[#allocation6 + $0x348] ss:$16 sps:$4 sm:$0xff]   ;;  %v4950_v32 = vld [vmem:[#allocation6 + $0x12c] ss:$16 sps:$4 sm:$0xff]  }
  0xfc   :  { %1905 = vmatmul.mubr.bf16.vlgmr.msra.gmra.mxu0 %v5631_v33 }
  0xfd   :  { %1946 = vmatmul.mubr.bf16.vlgmr.msra.gmra.mxu1 %v5635_v34  ;;  %1955 = vmatpush1.bf16.msra.mxu0 %v4864_v35  ;;  %v4953_v35 = vld [vmem:[#allocation6 + $0x32c] ss:$16 sps:$4 sm:$0xff]  }
  0xfe   :  { %1996 = vmatpush1.bf16.msra.mxu1 %v4867_v36  ;;  %1956 = vmatprep.subr.bf16.mxu0 %v4872_v37  ;;  %v4948_v36 = vld [vmem:[#allocation6 + $0x128] ss:$16 sps:$4 sm:$0xff]  }
  0xff   :  { %1997 = vmatprep.subr.bf16.mxu1 %v4875_v39  ;;  %1986 = vmatprep.mubr.bf16.mxu0 %v5598_v62  ;;  %v4888_v62 = vld [vmem:[#allocation6 + $0x68] ss:$16 sps:$4 sm:$0xff]   ;;  %v4956_v39 = vld [vmem:[#allocation6 + $0x10c] ss:$16 sps:$4 sm:$0xff]  }
 0x100   :  { %2027 = vmatprep.mubr.bf16.mxu1 %v5600_v3  ;;  %v4891_v3 = vld [vmem:[#allocation6 + $0x268] ss:$16 sps:$4 sm:$0xff]  }
 0x101   :  { %1957 = vmatpush1.bf16.msra.mxu0 %v4870_v40  ;;  %v4951_v37 = vld [vmem:[#allocation6 + $0x328] ss:$16 sps:$4 sm:$0xff]   ;;  %v4959_v40 = vld [vmem:[#allocation6 + $0x30c] ss:$16 sps:$4 sm:$0xff]  }
 0x102   :  { %1998 = vmatpush1.bf16.msra.mxu1 %v4873_v41  ;;  %1958 = vmatprep.subr.bf16.mxu0 %v4878_v42  ;;  %v4954_v41 = vld [vmem:[#allocation6 + $0x108] ss:$16 sps:$4 sm:$0xff]  }
 0x103   :  { %1999 = vmatprep.subr.bf16.mxu1 %v4881_v44  ;;  %v4957_v42 = vld [vmem:[#allocation6 + $0x308] ss:$16 sps:$4 sm:$0xff]   ;;  %v4962_v44 = vld [vmem:[#allocation6 + $0x4ec] ss:$16 sps:$4 sm:$0xff]  }
 0x105   :  { %1959 = vmatpush1.bf16.msra.mxu0 %v4876_v45  ;;  %v4965_v45 = vld [vmem:[#allocation6 + $0x6ec] ss:$16 sps:$4 sm:$0xff]  }
 0x106   :  { %2000 = vmatpush1.bf16.msra.mxu1 %v4879_v46  ;;  %1960 = vmatprep.subr.bf16.mxu0 %v4884_v47  ;;  %v4960_v46 = vld [vmem:[#allocation6 + $0x4e8] ss:$16 sps:$4 sm:$0xff]  }
 0x107   :  { %2001 = vmatprep.subr.bf16.mxu1 %v4887_v48  ;;  %v4963_v47 = vld [vmem:[#allocation6 + $0x6e8] ss:$16 sps:$4 sm:$0xff]   ;;  %v4968_v48 = vld [vmem:[#allocation6 + $0x4cc] ss:$16 sps:$4 sm:$0xff]  }
 0x109   :  { %1961 = vmatpush1.bf16.msra.mxu0 %v4882_v50  ;;  %v4971_v50 = vld [vmem:[#allocation6 + $0x6cc] ss:$16 sps:$4 sm:$0xff]  }
 0x10a   :  { %2002 = vmatpush1.bf16.msra.mxu1 %v4885_v51  ;;  %1962 = vmatprep.subr.bf16.mxu0 %v4890_v52  ;;  %v4966_v51 = vld [vmem:[#allocation6 + $0x4c8] ss:$16 sps:$4 sm:$0xff]  }
 0x10b   :  { %2003 = vmatprep.subr.bf16.mxu1 %v4893_v53  ;;  %v4969_v52 = vld [vmem:[#allocation6 + $0x6c8] ss:$16 sps:$4 sm:$0xff]   ;;  %v4974_v53 = vld [vmem:[#allocation6 + $0x4ac] ss:$16 sps:$4 sm:$0xff]  }
 0x10d   :  { %1963 = vmatpush1.bf16.msra.mxu0 %v4888_v62  ;;  %v4977_v62 = vld [vmem:[#allocation6 + $0x6ac] ss:$16 sps:$4 sm:$0xff]  }
 0x10e   :  { %2004 = vmatpush1.bf16.msra.mxu1 %v4891_v3  ;;  %1964 = vmatprep.subr.bf16.mxu0 %v4896_v55  ;;  %v4972_v3 = vld [vmem:[#allocation6 + $0x4a8] ss:$16 sps:$4 sm:$0xff]  }
 0x10f   :  { %2005 = vmatprep.subr.bf16.mxu1 %v4899_v56  ;;  %v4975_v55 = vld [vmem:[#allocation6 + $0x6a8] ss:$16 sps:$4 sm:$0xff]   ;;  %v4980_v56 = vld [vmem:[#allocation6 + $0x48c] ss:$16 sps:$4 sm:$0xff]  }
 0x111   :  { %1965 = vmatpush1.bf16.msra.mxu0 %v4894_v57  ;;  %v4978_v57 = vld [vmem:[#allocation6 + $0x488] ss:$16 sps:$4 sm:$0xff]  }
 0x112   :  { %2006 = vmatpush1.bf16.msra.mxu1 %v4897_v59  ;;  %1966 = vmatprep.subr.bf16.mxu0 %v4902_v60  ;;  %v4986_v59 = vld [vmem:[#allocation6 + $0x46c] ss:$16 sps:$4 sm:$0xff]  }
 0x113   :  { %2007 = vmatprep.subr.bf16.mxu1 %v4905_v61  ;;  %v4989_v60 = vld [vmem:[#allocation6 + $0x66c] ss:$16 sps:$4 sm:$0xff]   ;;  %v4984_v61 = vld [vmem:[#allocation6 + $0x468] ss:$16 sps:$4 sm:$0xff]  }
 0x115   :  { %1967 = vmatpush1.bf16.msra.mxu0 %v4900_v63  ;;  %v4987_v63 = vld [vmem:[#allocation6 + $0x668] ss:$16 sps:$4 sm:$0xff]  }
 0x116   :  { %2008 = vmatpush1.bf16.msra.mxu1 %v4903_v0  ;;  %1968 = vmatprep.subr.bf16.mxu0 %v4908_v1  ;;  %v4992_v0 = vld [vmem:[#allocation6 + $0x44c] ss:$16 sps:$4 sm:$0xff]   ;;  %v4993_v1 = vld [vmem:[#allocation6 + $0x648] ss:$16 sps:$4 sm:$0xff]  }
 0x117   :  { %2009 = vmatprep.subr.bf16.mxu1 %v4911_v2  ;;  %v4998_v2 = vld [vmem:[#allocation6 + $0x42c] ss:$16 sps:$4 sm:$0xff]  }
 0x119   :  { %1969 = vmatpush1.bf16.msra.mxu0 %v4906_v4  ;;  %v5001_v4 = vld [vmem:[#allocation6 + $0x62c] ss:$16 sps:$4 sm:$0xff]  }
 0x11a   :  { %2010 = vmatpush1.bf16.msra.mxu1 %v4909_v5  ;;  %1970 = vmatprep.subr.bf16.mxu0 %v4914_v6  ;;  %v4996_v5 = vld [vmem:[#allocation6 + $0x428] ss:$16 sps:$4 sm:$0xff]  }
 0x11b   :  { %2011 = vmatprep.subr.bf16.mxu1 %v4917_v7  ;;  %v4999_v6 = vld [vmem:[#allocation6 + $0x628] ss:$16 sps:$4 sm:$0xff]   ;;  %v5004_v7 = vld [vmem:[#allocation6 + $0x40c] ss:$16 sps:$4 sm:$0xff]  }
 0x11d   :  { %1971 = vmatpush2.bf16.msra.mxu0 %v4912_v8  ;;  %v5007_v8 = vld [vmem:[#allocation6 + $0x60c] ss:$16 sps:$4 sm:$0xff]  }
 0x11e   :  { %2012 = vmatpush2.bf16.msra.mxu1 %v4915_v9  ;;  %1972 = vmatprep.subr.bf16.mxu0 %v4920_v10  ;;  %v5002_v9 = vld [vmem:[#allocation6 + $0x408] ss:$16 sps:$4 sm:$0xff]  }
 0x11f   :  { %2013 = vmatprep.subr.bf16.mxu1 %v4923_v11  ;;  %v5005_v10 = vld [vmem:[#allocation6 + $0x608] ss:$16 sps:$4 sm:$0xff]   ;;  %v5010_v11 = vld [vmem:[#allocation6 + $0x5ec] ss:$16 sps:$4 sm:$0xff]  }
 0x121   :  { %1973 = vmatpush2.bf16.msra.mxu0 %v4918_v12  ;;  %v5013_v12 = vld [vmem:[#allocation6 + $0x7ec] ss:$16 sps:$4 sm:$0xff]  }
 0x122   :  { %2014 = vmatpush2.bf16.msra.mxu1 %v4921_v13  ;;  %1974 = vmatprep.subr.bf16.mxu0 %v4926_v14  ;;  %v5008_v13 = vld [vmem:[#allocation6 + $0x5e8] ss:$16 sps:$4 sm:$0xff]  }
 0x123   :  { %2015 = vmatprep.subr.bf16.mxu1 %v4929_v15  ;;  %v5011_v14 = vld [vmem:[#allocation6 + $0x7e8] ss:$16 sps:$4 sm:$0xff]   ;;  %v5016_v15 = vld [vmem:[#allocation6 + $0x5cc] ss:$16 sps:$4 sm:$0xff]  }
 0x125   :  { %1975 = vmatpush2.bf16.msra.mxu0 %v4924_v18  ;;  %v5019_v18 = vld [vmem:[#allocation6 + $0x7cc] ss:$16 sps:$4 sm:$0xff]  }
 0x126   :  { %2016 = vmatpush2.bf16.msra.mxu1 %v4927_v19  ;;  %1976 = vmatprep.subr.bf16.mxu0 %v4932_v20  ;;  %v5014_v19 = vld [vmem:[#allocation6 + $0x5c8] ss:$16 sps:$4 sm:$0xff]  }
 0x127   :  { %2017 = vmatprep.subr.bf16.mxu1 %v4935_v21  ;;  %v5017_v20 = vld [vmem:[#allocation6 + $0x7c8] ss:$16 sps:$4 sm:$0xff]   ;;  %v5022_v21 = vld [vmem:[#allocation6 + $0x5ac] ss:$16 sps:$4 sm:$0xff]  }
 0x129   :  { %1977 = vmatpush2.bf16.msra.mxu0 %v4930_v22  ;;  %v5025_v22 = vld [vmem:[#allocation6 + $0x7ac] ss:$16 sps:$4 sm:$0xff]  }
 0x12a   :  { %2018 = vmatpush2.bf16.msra.mxu1 %v4933_v23  ;;  %1978 = vmatprep.subr.bf16.mxu0 %v4938_v24  ;;  %v5020_v23 = vld [vmem:[#allocation6 + $0x5a8] ss:$16 sps:$4 sm:$0xff]  }
 0x12b   :  { %2019 = vmatprep.subr.bf16.mxu1 %v4941_v25  ;;  %v5023_v24 = vld [vmem:[#allocation6 + $0x7a8] ss:$16 sps:$4 sm:$0xff]   ;;  %v5028_v25 = vld [vmem:[#allocation6 + $0x58c] ss:$16 sps:$4 sm:$0xff]  }
 0x12d   :  { %1979 = vmatpush2.bf16.msra.mxu0 %v4936_v26  ;;  %v5031_v26 = vld [vmem:[#allocation6 + $0x78c] ss:$16 sps:$4 sm:$0xff]  }
 0x12e   :  { %2020 = vmatpush2.bf16.msra.mxu1 %v4939_v27  ;;  %1980 = vmatprep.subr.bf16.mxu0 %v4944_v28  ;;  %v5026_v27 = vld [vmem:[#allocation6 + $0x588] ss:$16 sps:$4 sm:$0xff]  }
 0x12f   :  { %2021 = vmatprep.subr.bf16.mxu1 %v4947_v29  ;;  %v5029_v28 = vld [vmem:[#allocation6 + $0x788] ss:$16 sps:$4 sm:$0xff]   ;;  %v5034_v29 = vld [vmem:[#allocation6 + $0x56c] ss:$16 sps:$4 sm:$0xff]  }
 0x131   :  { %1981 = vmatpush2.bf16.msra.mxu0 %v4942_v30  ;;  %v5037_v30 = vld [vmem:[#allocation6 + $0x76c] ss:$16 sps:$4 sm:$0xff]  }
 0x132   :  { %2022 = vmatpush2.bf16.msra.mxu1 %v4945_v31  ;;  %1982 = vmatprep.subr.bf16.mxu0 %v4950_v32  ;;  %v5032_v31 = vld [vmem:[#allocation6 + $0x568] ss:$16 sps:$4 sm:$0xff]  }
 0x133   :  { %2023 = vmatprep.subr.bf16.mxu1 %v4953_v35  ;;  %v5035_v32 = vld [vmem:[#allocation6 + $0x768] ss:$16 sps:$4 sm:$0xff]   ;;  %v5040_v35 = vld [vmem:[#allocation6 + $0x54c] ss:$16 sps:$4 sm:$0xff]  }
 0x135   :  { %1983 = vmatpush2.bf16.msra.mxu0 %v4948_v36  ;;  %v5043_v36 = vld [vmem:[#allocation6 + $0x74c] ss:$16 sps:$4 sm:$0xff]  }
 0x136   :  { %2024 = vmatpush2.bf16.msra.mxu1 %v4951_v37  ;;  %1984 = vmatprep.subr.bf16.mxu0 %v4956_v39  ;;  %v5038_v37 = vld [vmem:[#allocation6 + $0x548] ss:$16 sps:$4 sm:$0xff]  }
 0x137   :  { %2025 = vmatprep.subr.bf16.mxu1 %v4959_v40  ;;  %v5041_v39 = vld [vmem:[#allocation6 + $0x748] ss:$16 sps:$4 sm:$0xff]   ;;  %v5046_v40 = vld [vmem:[#allocation6 + $0x52c] ss:$16 sps:$4 sm:$0xff]  }
 0x139   :  { %1985 = vmatpush2.bf16.msra.mxu0 %v4954_v41  ;;  %v5049_v41 = vld [vmem:[#allocation6 + $0x72c] ss:$16 sps:$4 sm:$0xff]  }
 0x13a   :  { %2026 = vmatpush2.bf16.msra.mxu1 %v4957_v42  ;;  %2036 = vmatprep.subr.bf16.mxu0 %v4962_v44  ;;  %v5044_v42 = vld [vmem:[#allocation6 + $0x528] ss:$16 sps:$4 sm:$0xff]  }
 0x13b   :  { %2077 = vmatprep.subr.bf16.mxu1 %v4965_v45  ;;  %v5047_v44 = vld [vmem:[#allocation6 + $0x728] ss:$16 sps:$4 sm:$0xff]   ;;  %v5052_v45 = vld [vmem:[#allocation6 + $0x50c] ss:$16 sps:$4 sm:$0xff]  }
 0x13c   :  { %1987 = vmatmul.mubr.bf16.vlgmr.msra.gmra.mxu0 %v5604_v16  ;;  %v4983_v16 = vld [vmem:[#allocation6 + $0x68c] ss:$16 sps:$4 sm:$0xff]  }
 0x13d   :  { %2028 = vmatmul.mubr.bf16.vlgmr.msra.gmra.mxu1 %v5606_v17  ;;  %2037 = vmatpush1.bf16.msra.mxu0 %v4960_v46  ;;  %v4981_v17 = vld [vmem:[#allocation6 + $0x688] ss:$16 sps:$4 sm:$0xff]   ;;  %v5055_v46 = vld [vmem:[#allocation6 + $0x70c] ss:$16 sps:$4 sm:$0xff]  }
 0x13e   :  { %2078 = vmatpush1.bf16.msra.mxu1 %v4963_v47  ;;  %2038 = vmatprep.subr.bf16.mxu0 %v4968_v48  ;;  %v5050_v47 = vld [vmem:[#allocation6 + $0x508] ss:$16 sps:$4 sm:$0xff]  }
 0x13f   :  { %2079 = vmatprep.subr.bf16.mxu1 %v4971_v50  ;;  %2068 = vmatprep.mubr.bf16.mxu0 %v5621_v54  ;;  %v4995_v54 = vld [vmem:[#allocation6 + $0x64c] ss:$16 sps:$4 sm:$0xff]   ;;  %v5053_v48 = vld [vmem:[#allocation6 + $0x708] ss:$16 sps:$4 sm:$0xff]  }
 0x140   :  { %2109 = vmatprep.mubr.bf16.mxu1 %v5625_v58  ;;  %v4990_v58 = vld [vmem:[#allocation6 + $0x448] ss:$16 sps:$4 sm:$0xff]   ;;  %v5058_v50 = vld [vmem:[#allocation7 + $0x74] ss:$8 sps:$4 sm:$0xff]  }
 0x141   :  { %2039 = vmatpush1.bf16.msra.mxu0 %v4966_v51  ;;  %v5056_v51 = vld [vmem:[#allocation7 + $0x70] ss:$8 sps:$4 sm:$0xff]  }
 0x142   :  { %2080 = vmatpush1.bf16.msra.mxu1 %v4969_v52  ;;  %2040 = vmatprep.subr.bf16.mxu0 %v4974_v53  ;;  %v5061_v52 = vld [vmem:[#allocation7 + $0x64] ss:$8 sps:$4 sm:$0xff]  }
 0x143   :  { %2081 = vmatprep.subr.bf16.mxu1 %v4977_v62 }
 0x145   :  { %2041 = vmatpush1.bf16.msra.mxu0 %v4972_v3  ;;  %v5059_v3 = vld [vmem:[#allocation7 + $0x60] ss:$8 sps:$4 sm:$0xff]  }
 0x146   :  { %2082 = vmatpush1.bf16.msra.mxu1 %v4975_v55  ;;  %2042 = vmatprep.subr.bf16.mxu0 %v4980_v56 }
 0x147   :  { %2083 = vmatprep.subr.bf16.mxu1 %v4983_v16  ;;  %v5064_v16 = vld [vmem:[#allocation7 + $0x54] ss:$8 sps:$4 sm:$0xff]  }
 0x149   :  { %2043 = vmatpush1.bf16.msra.mxu0 %v4978_v57 }
 0x14a   :  { %2084 = vmatpush1.bf16.msra.mxu1 %v4981_v17  ;;  %2044 = vmatprep.subr.bf16.mxu0 %v4986_v59  ;;  %v5062_v59 = vld [vmem:[#allocation7 + $0x50] ss:$8 sps:$4 sm:$0xff]  }
 0x14b   :  { %2085 = vmatprep.subr.bf16.mxu1 %v4989_v60 }
 0x14d   :  { %2045 = vmatpush1.bf16.msra.mxu0 %v4984_v61 }
 0x14e   :  { %2086 = vmatpush1.bf16.msra.mxu1 %v4987_v63  ;;  %2046 = vmatprep.subr.bf16.mxu0 %v4992_v0  ;;  %v5067_v63 = vld [vmem:[#allocation7 + $0x44] ss:$8 sps:$4 sm:$0xff]   ;;  %v5104_v0 = vld [vmem:[#allocation7 + $0x170] ss:$8 sps:$4 sm:$0xff]  }
 0x14f   :  { %2087 = vmatprep.subr.bf16.mxu1 %v4995_v54  ;;  %v5109_v54 = vld [vmem:[#allocation7 + $0x164] ss:$8 sps:$4 sm:$0xff]  }
 0x151   :  { %2047 = vmatpush1.bf16.msra.mxu0 %v4990_v58  ;;  %v5107_v58 = vld [vmem:[#allocation7 + $0x160] ss:$8 sps:$4 sm:$0xff]  }
 0x152   :  { %2088 = vmatpush1.bf16.msra.mxu1 %v4993_v1  ;;  %2048 = vmatprep.subr.bf16.mxu0 %v4998_v2  ;;  %v5070_v1 = vld [vmem:[#allocation7 + $0x34] ss:$8 sps:$4 sm:$0xff]  }
 0x153   :  { %2089 = vmatprep.subr.bf16.mxu1 %v5001_v4  ;;  %v5112_v2 = vld [vmem:[#allocation7 + $0x154] ss:$8 sps:$4 sm:$0xff]   ;;  %v5068_v4 = vld [vmem:[#allocation7 + $0x30] ss:$8 sps:$4 sm:$0xff]  }
 0x155   :  { %2049 = vmatpush1.bf16.msra.mxu0 %v4996_v5  ;;  %v5110_v5 = vld [vmem:[#allocation7 + $0x150] ss:$8 sps:$4 sm:$0xff]  }
 0x156   :  { %2090 = vmatpush1.bf16.msra.mxu1 %v4999_v6  ;;  %2050 = vmatprep.subr.bf16.mxu0 %v5004_v7  ;;  %v5073_v6 = vld [vmem:[#allocation7 + $0x24] ss:$8 sps:$4 sm:$0xff]  }
 0x157   :  { %2091 = vmatprep.subr.bf16.mxu1 %v5007_v8  ;;  %v5115_v7 = vld [vmem:[#allocation7 + $0x144] ss:$8 sps:$4 sm:$0xff]   ;;  %v5071_v8 = vld [vmem:[#allocation7 + $0x20] ss:$8 sps:$4 sm:$0xff]  }
 0x159   :  { %2051 = vmatpush1.bf16.msra.mxu0 %v5002_v9  ;;  %v5113_v9 = vld [vmem:[#allocation7 + $0x140] ss:$8 sps:$4 sm:$0xff]  }
 0x15a   :  { %2092 = vmatpush1.bf16.msra.mxu1 %v5005_v10  ;;  %2052 = vmatprep.subr.bf16.mxu0 %v5010_v11  ;;  %v5076_v10 = vld [vmem:[#allocation7 + $0x14] ss:$8 sps:$4 sm:$0xff]  }
 0x15b   :  { %2093 = vmatprep.subr.bf16.mxu1 %v5013_v12  ;;  %v5118_v11 = vld [vmem:[#allocation7 + $0x134] ss:$8 sps:$4 sm:$0xff]   ;;  %v5074_v12 = vld [vmem:[#allocation7 + $0x10] ss:$8 sps:$4 sm:$0xff]  }
 0x15d   :  { %2053 = vmatpush2.bf16.msra.mxu0 %v5008_v13  ;;  %v5116_v13 = vld [vmem:[#allocation7 + $0x130] ss:$8 sps:$4 sm:$0xff]  }
 0x15e   :  { %2094 = vmatpush2.bf16.msra.mxu1 %v5011_v14  ;;  %2054 = vmatprep.subr.bf16.mxu0 %v5016_v15  ;;  %v5079_v14 = vld [vmem:[#allocation7 + $0x4] ss:$8 sps:$4 sm:$0xff]  }
 0x15f   :  { %2095 = vmatprep.subr.bf16.mxu1 %v5019_v18  ;;  %v5121_v15 = vld [vmem:[#allocation7 + $0x124] ss:$8 sps:$4 sm:$0xff]   ;;  %v5077_v18 = vld [vmem:[#allocation7] ss:$8 sps:$4 sm:$0xff]  }
 0x161   :  { %2055 = vmatpush2.bf16.msra.mxu0 %v5014_v19  ;;  %v5119_v19 = vld [vmem:[#allocation7 + $0x120] ss:$8 sps:$4 sm:$0xff]  }
 0x162   :  { %2096 = vmatpush2.bf16.msra.mxu1 %v5017_v20  ;;  %2056 = vmatprep.subr.bf16.mxu0 %v5022_v21  ;;  %v5082_v20 = vld [vmem:[#allocation7 + $0xf4] ss:$8 sps:$4 sm:$0xff]  }
 0x163   :  { %2097 = vmatprep.subr.bf16.mxu1 %v5025_v22  ;;  %v5124_v21 = vld [vmem:[#allocation7 + $0x114] ss:$8 sps:$4 sm:$0xff]   ;;  %v5080_v22 = vld [vmem:[#allocation7 + $0xf0] ss:$8 sps:$4 sm:$0xff]  }
 0x165   :  { %2057 = vmatpush2.bf16.msra.mxu0 %v5020_v23  ;;  %v5122_v23 = vld [vmem:[#allocation7 + $0x110] ss:$8 sps:$4 sm:$0xff]  }
 0x166   :  { %2098 = vmatpush2.bf16.msra.mxu1 %v5023_v24  ;;  %2058 = vmatprep.subr.bf16.mxu0 %v5028_v25  ;;  %v5085_v24 = vld [vmem:[#allocation7 + $0xe4] ss:$8 sps:$4 sm:$0xff]  }
 0x167   :  { %2099 = vmatprep.subr.bf16.mxu1 %v5031_v26  ;;  %v5127_v25 = vld [vmem:[#allocation7 + $0x104] ss:$8 sps:$4 sm:$0xff]   ;;  %v5083_v26 = vld [vmem:[#allocation7 + $0xe0] ss:$8 sps:$4 sm:$0xff]  }
 0x169   :  { %2059 = vmatpush2.bf16.msra.mxu0 %v5026_v27  ;;  %v5125_v27 = vld [vmem:[#allocation7 + $0x100] ss:$8 sps:$4 sm:$0xff]  }
 0x16a   :  { %2100 = vmatpush2.bf16.msra.mxu1 %v5029_v28  ;;  %2060 = vmatprep.subr.bf16.mxu0 %v5034_v29  ;;  %v5088_v28 = vld [vmem:[#allocation7 + $0xd4] ss:$8 sps:$4 sm:$0xff]  }
 0x16b   :  { %2101 = vmatprep.subr.bf16.mxu1 %v5037_v30  ;;  %v5130_v29 = vld [vmem:[#allocation7 + $0x1f4] ss:$8 sps:$4 sm:$0xff]   ;;  %v5086_v30 = vld [vmem:[#allocation7 + $0xd0] ss:$8 sps:$4 sm:$0xff]  }
 0x16d   :  { %2061 = vmatpush2.bf16.msra.mxu0 %v5032_v31  ;;  %v5128_v31 = vld [vmem:[#allocation7 + $0x1f0] ss:$8 sps:$4 sm:$0xff]  }
 0x16e   :  { %2102 = vmatpush2.bf16.msra.mxu1 %v5035_v32  ;;  %2062 = vmatprep.subr.bf16.mxu0 %v5040_v35  ;;  %v5091_v32 = vld [vmem:[#allocation7 + $0xc4] ss:$8 sps:$4 sm:$0xff]  }
 0x16f   :  { %2103 = vmatprep.subr.bf16.mxu1 %v5043_v36  ;;  %v5133_v35 = vld [vmem:[#allocation7 + $0x1e4] ss:$8 sps:$4 sm:$0xff]   ;;  %v5089_v36 = vld [vmem:[#allocation7 + $0xc0] ss:$8 sps:$4 sm:$0xff]  }
 0x171   :  { %2063 = vmatpush2.bf16.msra.mxu0 %v5038_v37  ;;  %v5131_v37 = vld [vmem:[#allocation7 + $0x1e0] ss:$8 sps:$4 sm:$0xff]  }
 0x172   :  { %2104 = vmatpush2.bf16.msra.mxu1 %v5041_v39  ;;  %2064 = vmatprep.subr.bf16.mxu0 %v5046_v40  ;;  %v5094_v39 = vld [vmem:[#allocation7 + $0xb4] ss:$8 sps:$4 sm:$0xff]  }
 0x173   :  { %2105 = vmatprep.subr.bf16.mxu1 %v5049_v41  ;;  %v5136_v40 = vld [vmem:[#allocation7 + $0x1d4] ss:$8 sps:$4 sm:$0xff]   ;;  %v5092_v41 = vld [vmem:[#allocation7 + $0xb0] ss:$8 sps:$4 sm:$0xff]  }
 0x175   :  { %2065 = vmatpush2.bf16.msra.mxu0 %v5044_v42  ;;  %v5134_v42 = vld [vmem:[#allocation7 + $0x1d0] ss:$8 sps:$4 sm:$0xff]  }
 0x176   :  { %2106 = vmatpush2.bf16.msra.mxu1 %v5047_v44  ;;  %2066 = vmatprep.subr.bf16.mxu0 %v5052_v45  ;;  %v5097_v44 = vld [vmem:[#allocation7 + $0xa4] ss:$8 sps:$4 sm:$0xff]  }
 0x177   :  { %2107 = vmatprep.subr.bf16.mxu1 %v5055_v46  ;;  %v5139_v45 = vld [vmem:[#allocation7 + $0x1c4] ss:$8 sps:$4 sm:$0xff]   ;;  %v5095_v46 = vld [vmem:[#allocation7 + $0xa0] ss:$8 sps:$4 sm:$0xff]  }
 0x179   :  { %2067 = vmatpush2.bf16.msra.mxu0 %v5050_v47  ;;  %v5137_v47 = vld [vmem:[#allocation7 + $0x1c0] ss:$8 sps:$4 sm:$0xff]  }
 0x17a   :  { %2108 = vmatpush2.bf16.msra.mxu1 %v5053_v48  ;;  %2522 = vmatprep.subr.bf16.mxu0 %v5058_v50  ;;  %v5100_v48 = vld [vmem:[#allocation7 + $0x94] ss:$8 sps:$4 sm:$0xff]  }
 0x17b   :  { %v5142_v50 = vld [vmem:[#allocation7 + $0x1b4] ss:$8 sps:$4 sm:$0xff]  }
 0x17c   :  { %v5645_v53 = vpop.f32.mrf.mxu0  ;;  %2069 = vmatmul.mubr.bf16.vlgmr.msra.gmra.mxu0 %v5631_v33  ;;  %v5106_v33 = vld [vmem:[#allocation7 + $0x174] ss:$8 sps:$4 sm:$0xff]  }
 0x17d   :  { %v5647_v62 = vpop.f32.mrf.mxu1  ;;  %2110 = vmatmul.mubr.bf16.vlgmr.msra.gmra.mxu1 %v5635_v34  ;;  %2523 = vmatpush1.bf16.msra.mxu0 %v5056_v51  ;;  %v5065_v34 = vld [vmem:[#allocation7 + $0x40] ss:$8 sps:$4 sm:$0xff]   ;;  %v5656_v51 = vsub.s32 0, %v5588_v43 }
 0x17e   :  { %v5651_v55 = vpop.f32.mrf.mxu0  ;;  %2524 = vmatprep.subr.bf16.mxu0 %v5061_v52  ;;  %2563 = vmatprep.subr.bf16.mxu1 %v5106_v33  ;;  %v5658_v52 = vld [vmem:[#allocation16] sm:$0xf]  ;;  %v5145_v33 = vld [vmem:[#allocation7 + $0x1a4] ss:$8 sps:$4 sm:$0xff]  }
 0x17f   :  { %v5653_v56 = vpop.f32.mrf.mxu1  ;;  %2564 = vmatpush1.bf16.msra.mxu1 %v5104_v0 }
 0x180   :  { %v1828_v57 = vpop.f32.mrf.mxu0  ;;  %2565 = vmatprep.subr.bf16.mxu1 %v5109_v54 }
 0x181   :  { %v1869_v17 = vpop.f32.mrf.mxu1  ;;  %2525 = vmatpush1.bf16.msra.mxu0 %v5059_v3  ;;  %v5661_v3 = vsub.s32 1, %v5588_v43  ;;  %v5140_v57 = vld [vmem:[#allocation7 + $0x1b0] ss:$8 sps:$4 sm:$0xff]  }
 0x182   :  { %v1829_v60 = vpop.f32.mrf.mxu0  ;;  %2526 = vmatprep.subr.bf16.mxu0 %v5064_v16  ;;  %v5098_v16 = vld [vmem:[#allocation7 + $0x90] ss:$8 sps:$4 sm:$0xff]   ;;  %v5103_v17 = vld [vmem:[#allocation7 + $0x84] ss:$8 sps:$4 sm:$0xff]  }
 0x183   :  { %v1870_v61 = vpop.f32.mrf.mxu1  ;;  %2566 = vmatpush1.bf16.msra.mxu1 %v5107_v58  ;;  %v497_v60 = vrot.slane %v5658_v52, %v5661_v3 }
 0x184   :  { %2567 = vmatprep.subr.bf16.mxu1 %v5112_v2  ;;  %v5101_v61 = vld [vmem:[#allocation7 + $0x80] ss:$8 sps:$4 sm:$0xff]  }
 0x185   :  { %2527 = vmatpush1.bf16.msra.mxu0 %v5062_v59  ;;  %v493_v59 = vrot.slane %v5658_v52, %v5656_v51  ;;  %v1827_v0 = vadd.f32 %v5651_v55, %v497_v60 }
 0x186   :  { %2528 = vmatprep.subr.bf16.mxu0 %v5067_v63 }
 0x187   :  { %2568 = vmatpush1.bf16.msra.mxu1 %v5110_v5  ;;  %v1825_v63 = vadd.f32 %v5645_v53, %v493_v59  ;;  %v1868_v2 = vadd.f32 %v5653_v56, %v1827_v0  ;;  %v5146_v53 = vld [vmem:[#allocation7 + $0x190] ss:$8 sps:$4 sm:$0xff]  }
 0x188   :  { %2569 = vmatprep.subr.bf16.mxu1 %v5115_v7  ;;  %v5148_v7 = vld [vmem:[#allocation7 + $0x194] ss:$8 sps:$4 sm:$0xff]  }
 0x189   :  { %2529 = vmatpush1.bf16.msra.mxu0 %v5065_v34  ;;  %v1866_v54 = vadd.f32 %v5647_v62, %v1825_v63  ;;  %v5143_v34 = vld [vmem:[#allocation7 + $0x1a0] ss:$8 sps:$4 sm:$0xff]  }
 0x18a   :  { %2530 = vmatprep.subr.bf16.mxu0 %v5070_v1 }
 0x18b   :  { %2570 = vmatpush1.bf16.msra.mxu1 %v5113_v9 }
 0x18c   :  { %2571 = vmatprep.subr.bf16.mxu1 %v5118_v11 }
 0x18d   :  { %2531 = vmatpush1.bf16.msra.mxu0 %v5068_v4 }
 0x18e   :  { %2532 = vmatprep.subr.bf16.mxu0 %v5073_v6 }
 0x18f   :  { %2572 = vmatpush1.bf16.msra.mxu1 %v5116_v13 }
 0x190   :  { %2573 = vmatprep.subr.bf16.mxu1 %v5121_v15 }
 0x191   :  { %2533 = vmatpush1.bf16.msra.mxu0 %v5071_v8 }
 0x192   :  { %2534 = vmatprep.subr.bf16.mxu0 %v5076_v10 }
 0x193   :  { %2574 = vmatpush1.bf16.msra.mxu1 %v5119_v19 }
 0x194   :  { %2575 = vmatprep.subr.bf16.mxu1 %v5124_v21 }
 0x195   :  { %2535 = vmatpush1.bf16.msra.mxu0 %v5074_v12 }
 0x196   :  { %2536 = vmatprep.subr.bf16.mxu0 %v5079_v14  ;;  %v5151_v14 = vld [vmem:[#allocation7 + $0x184] ss:$8 sps:$4 sm:$0xff]  }
 0x197   :  { %2576 = vmatpush1.bf16.msra.mxu1 %v5122_v23  ;;  %v5471_v23 = vmov 0  }
 0x198   :  { %2577 = vmatprep.subr.bf16.mxu1 %v5127_v25  ;;  %4669 = vset.pattern.permute.xlu1 %v5471_v23  ;;  %v5674_v25 = vld [vmem:[#allocation4] sm:$0x3] }
 0x199   :  { %2537 = vmatpush1.bf16.msra.mxu0 %v5077_v18  ;;  %v5149_v18 = vld [vmem:[#allocation7 + $0x180] ss:$8 sps:$4 sm:$0xff]   ;;  %2976 = vrot.lane.b32.xlu1 %v5674_v25, %s5464_s4 }
 0x19a   :  { %2538 = vmatprep.subr.bf16.mxu0 %v5082_v20  ;;  %v2787_v20 = vld [vmem:[#allocation9] sm:$0x77] }
 0x19b   :  { %2578 = vmatpush1.bf16.msra.mxu1 %v5125_v27  ;;  %v4468_v21 = vcombine.high %v2787_v20, %v2787_v20 }
 0x19c   :  { %2579 = vmatprep.subr.bf16.mxu1 %v5130_v29 }
 0x19d   :  { %2539 = vmatpush2.bf16.msra.mxu0 %v5080_v22  ;;  %v4467_v22 = vcombine.low %v2787_v20, %v2787_v20  ;;  %v5165_v20 = vld [vmem:[#allocation10 + $0x4] ss:$8 sps:$4 sm:$0xff]  }
 0x19e   :  { %2540 = vmatprep.subr.bf16.mxu0 %v5085_v24 }
 0x19f   :  { %2580 = vmatpush2.bf16.msra.mxu1 %v5128_v31  ;;  %v5672_v24 = vsel %vm2797_vm0, %v4467_v22, 0  ;;  %v2845_v22 = vpack.c.bf16 %v5674_v25, %v5674_v25  ;;  %v5180_v25 = vld [vmem:[%s5862_s6 + $0x40] sm:$0xff]  }
 0x1a0   :  { %2581 = vmatprep.subr.bf16.mxu1 %v5133_v35 }
 0x1a1   :  { %2541 = vmatpush2.bf16.msra.mxu0 %v5083_v26 }
 0x1a2   :  { %2542 = vmatprep.subr.bf16.mxu0 %v5088_v28 }
 0x1a3   :  { %2582 = vmatpush2.bf16.msra.mxu1 %v5131_v37  ;;  %v5166_v37 = vld [vmem:[%s5862_s6 + $0x78] sm:$0xff]  }
 0x1a4   :  { %2583 = vmatprep.subr.bf16.mxu1 %v5136_v40  ;;  %v5168_v40 = vld [vmem:[%s5862_s6 + $0x70] sm:$0xff]  }
 0x1a5   :  { %2543 = vmatpush2.bf16.msra.mxu0 %v5086_v30 }
 0x1a6   :  { %2544 = vmatprep.subr.bf16.mxu0 %v5091_v32 }
 0x1a7   :  { %2584 = vmatpush2.bf16.msra.mxu1 %v5134_v42  ;;  %v5170_v42 = vld [vmem:[%s5862_s6 + $0x68] sm:$0xff]  }
 0x1a8   :  { %2585 = vmatprep.subr.bf16.mxu1 %v5139_v45  ;;  %v5172_v45 = vld [vmem:[%s5862_s6 + $0x60] sm:$0xff]  }
 0x1a9   :  { %2545 = vmatpush2.bf16.msra.mxu0 %v5089_v36  ;;  %v5678_v36 = vld [vmem:[#allocation16 + $0x8] ss:$0 sm:$0xff] }
 0x1aa   :  { %2546 = vmatprep.subr.bf16.mxu0 %v5094_v39  ;;  %v5167_v39 = vld [vmem:[%s5862_s6 + $0x38] sm:$0xff]   ;;  %2962 = vrot.lane.b32.xlu0 %v5678_v36, %s5464_s4 }
 0x1ab   :  { %2586 = vmatpush2.bf16.msra.mxu1 %v5137_v47  ;;  %v5174_v47 = vld [vmem:[%s5862_s6 + $0x58] sm:$0xff]  }
 0x1ac   :  { %2587 = vmatprep.subr.bf16.mxu1 %v5142_v50  ;;  %v5176_v50 = vld [vmem:[%s5862_s6 + $0x50] sm:$0xff]  }
 0x1ad   :  { %2547 = vmatpush2.bf16.msra.mxu0 %v5092_v41  ;;  %v5169_v41 = vld [vmem:[%s5862_s6 + $0x30] sm:$0xff]  }
 0x1ae   :  { %2548 = vmatprep.subr.bf16.mxu0 %v5097_v44  ;;  %v5171_v44 = vld [vmem:[%s5862_s6 + $0x28] sm:$0xff]  }
 0x1af   :  { %2588 = vmatpush2.bf16.msra.mxu1 %v5140_v57  ;;  %v500_v57 = vsub.s32 2, %v5588_v43 }
 0x1b0   :  { %2589 = vmatprep.subr.bf16.mxu1 %v5145_v33 }
 0x1b1   :  { %2549 = vmatpush2.bf16.msra.mxu0 %v5095_v46  ;;  %v5173_v46 = vld [vmem:[%s5862_s6 + $0x20] sm:$0xff]   ;;  %v501_v59 = vrot.slane %v5658_v52, %v500_v57 }
 0x1b2   :  { %2550 = vmatprep.subr.bf16.mxu0 %v5100_v48  ;;  %v5175_v48 = vld [vmem:[%s5862_s6 + $0x18] sm:$0xff]  }
 0x1b3   :  { %2590 = vmatpush2.bf16.msra.mxu1 %v5143_v34 }
 0x1b4   :  { %2591 = vmatprep.subr.bf16.mxu1 %v5148_v7 }
 0x1b5   :  { %2551 = vmatpush2.bf16.msra.mxu0 %v5098_v16  ;;  %v5177_v16 = vld [vmem:[%s5862_s6 + $0x10] sm:$0xff]  }
 0x1b6   :  { %2552 = vmatprep.subr.bf16.mxu0 %v5103_v17  ;;  %v504_v17 = vsub.s32 3, %v5588_v43 }
 0x1b7   :  { %2592 = vmatpush2.bf16.msra.mxu1 %v5146_v53 }
 0x1b8   :  { %2593 = vmatprep.subr.bf16.mxu1 %v5151_v14  ;;  %v505_v60 = vrot.slane %v5658_v52, %v504_v17  ;;  %v5154_v14 = vld [vmem:[#allocation10 + $0x30] ss:$8 sps:$4 sm:$0xff]  }
 0x1b9   :  { %2553 = vmatpush2.bf16.msra.mxu0 %v5101_v61 }
 0x1ba   :  { %4589 = vmatprep.subr.bf16.mxu0 %v5166_v37 }
 0x1bb   :  { %2594 = vmatpush2.bf16.msra.mxu1 %v5149_v18  ;;  %v5157_v18 = vld [vmem:[#allocation10 + $0x20] ss:$8 sps:$4 sm:$0xff]  }
 0x1bc   :  { %v1906_v58 = vpop.f32.mrf.mxu0  ;;  %4469 = vmatprep.subr.msk.bf16.mxu1 %vm2797_vm0, %v4468_v21  ;;  %v5163_v21 = vld [vmem:[#allocation10] ss:$8 sps:$4 sm:$0xff]  }
 0x1bd   :  { %v1947_v1 = vpop.f32.mrf.mxu1  ;;  %v1907_v4 = vadd.f32 %v1906_v58, %v1866_v54 }
 0x1be   :  { %v1908_v5 = vpop.f32.mrf.mxu0 }
 0x1bf   :  { %v1949_v6 = vpop.f32.mrf.mxu1  ;;  %v1948_v8 = vadd.f32 %v1947_v1, %v1907_v4  ;;  %v1909_v9 = vadd.f32 %v1908_v5, %v1868_v2 }
 0x1c0   :  { %v1910_v10 = vpop.f32.mrf.mxu0 }
 0x1c1   :  { %v1951_v55 = vpop.f32.mrf.mxu1  ;;  %v1950_v11 = vadd.f32 %v1949_v6, %v1909_v9  ;;  %v2118_v62 = vmax.f32 %v1948_v8, 0.0 }
 0x1c2   :  { %v1911_v12 = vpop.f32.mrf.mxu0 }
 0x1c3   :  { %v1952_v13 = vpop.f32.mrf.mxu1  ;;  %v2119_v15 = vmax.f32 %v1950_v11, 0.0  ;;  %v2122_v19 = vpack.c.bf16 %v2118_v62, %v2118_v62  ;;  %v5156_v62 = vld [vmem:[#allocation10 + $0x34] ss:$8 sps:$4 sm:$0xff]  }
 0x1c4   :  { %v2785_v12 = vld [vmem:[#allocation2] sm:$0x3] }
 0x1c5   :  { %v2123_v56 = vpack.c.bf16 %v2119_v15, %v2119_v15  ;;  %v2786_v13 = vpack.c.bf16 %v2785_v12, %v2785_v12  ;;  %v5159_v15 = vld [vmem:[#allocation10 + $0x24] ss:$8 sps:$4 sm:$0xff]   ;;  %v5183_v12 = vld [vmem:[#allocation12 + $0x30] sm:$0xff]  }
 0x1c7   :  { %2554 = vmatprep.mubr.bf16.mxu0 %v2123_v56  ;;  %v5162_v56 = vld [vmem:[#allocation10 + $0x14] ss:$8 sps:$4 sm:$0xff]  }
 0x1c8   :  { %2555 = vmatmul.mubr.bf16.vlgmr.msra.gmra.mxu0 %v2122_v19  ;;  %v5160_v19 = vld [vmem:[#allocation10 + $0x10] ss:$8 sps:$4 sm:$0xff]  }
 0x1c9   :  { %4590 = vmatpush3.bf16.msra.mxu0 %v5167_v39 }
 0x1ca   :  { %4591 = vmatprep.subr.bf16.mxu0 %v5168_v40 }
 0x1cd   :  { %4592 = vmatpush3.bf16.msra.mxu0 %v5169_v41 }
 0x1ce   :  { %4593 = vmatprep.subr.bf16.mxu0 %v5170_v42 }
 0x1d1   :  { %4594 = vmatpush3.bf16.msra.mxu0 %v5171_v44 }
 0x1d2   :  { %4595 = vmatprep.subr.bf16.mxu0 %v5172_v45 }
 0x1d5   :  { %4596 = vmatpush3.bf16.msra.mxu0 %v5173_v46 }
 0x1d6   :  { %4597 = vmatprep.subr.bf16.mxu0 %v5174_v47 }
 0x1d9   :  { %4598 = vmatpush3.bf16.msra.mxu0 %v5175_v48 }
 0x1da   :  { %4599 = vmatprep.subr.bf16.mxu0 %v5176_v50 }
 0x1dd   :  { %4600 = vmatpush3.bf16.msra.mxu0 %v5177_v16 }
 0x1fc   :  { %v1988_v26 = vpop.f32.mrf.mxu0 }
 0x1fd   :  { %v2029_v27 = vpop.f32.mrf.mxu1  ;;  %v1989_v61 = vadd.f32 %v1988_v26, %v501_v59  ;;  %v5178_v26 = vld [vmem:[%s5862_s6 + $0x48] sm:$0xff]  }
 0x1fe   :  { %v1990_v28 = vpop.f32.mrf.mxu0  ;;  %4601 = vmatprep.subr.bf16.mxu0 %v5178_v26 }
 0x1ff   :  { %v2031_v29 = vpop.f32.mrf.mxu1  ;;  %v1991_v63 = vadd.f32 %v1990_v28, %v505_v60  ;;  %v2030_v0 = vadd.f32 %v2029_v27, %v1989_v61  ;;  %v5179_v28 = vld [vmem:[%s5862_s6 + $0x8] sm:$0xff]  }
 0x200   :  { %v1992_v30 = vpop.f32.mrf.mxu0  ;;  %4602 = vmatpush3.bf16.msra.mxu0 %v5179_v28 }
 0x201   :  { %v2033_v31 = vpop.f32.mrf.mxu1  ;;  %v2032_v34 = vadd.f32 %v2031_v29, %v1991_v63  ;;  %4603 = vmatprep.subr.bf16.mxu0 %v5180_v25 }
 0x202   :  { %v1993_v32 = vpop.f32.mrf.mxu0  ;;  %v5181_v31 = vld [vmem:[%s5862_s6] sm:$0xff]  }
 0x203   :  { %v2034_v35 = vpop.f32.mrf.mxu1  ;;  %v2190_v32 = vld [vmem:[#allocation16 + $0x4] sm:$0x3] }
 0x204   :  { %4604 = vmatpush3.bf16.msra.mxu0 %v5181_v31  ;;  %v2195_v35 = vrot.slane %v2190_v32, %v5656_v51  ;;  %v2199_v37 = vrot.slane %v2190_v32, %v5661_v3  ;;  %v5194_v32 = vld [vmem:[%s5866_s10 + $0x38] sm:$0xff]  }
 0x20b   :  { %v2977_v28 = vpop.permute.xlu1 %2976 }
 0x23c   :  { %v2070_v33 = vpop.f32.mrf.mxu0 }
 0x23d   :  { %v2111_v54 = vpop.f32.mrf.mxu1  ;;  %v2071_v58 = vadd.f32 %v2070_v33, %v2030_v0 }
 0x23e   :  { %v2072_v1 = vpop.f32.mrf.mxu0 }
 0x23f   :  { %v2113_v2 = vpop.f32.mrf.mxu1  ;;  %v2112_v4 = vadd.f32 %v2111_v54, %v2071_v58  ;;  %v2073_v5 = vadd.f32 %v2072_v1, %v2032_v34  ;;  %v4480_v54 = vld [vmem:[#allocation16 + $0x7] ss:$0 sm:$0xff] }
 0x240   :  { %v2074_v6 = vpop.f32.mrf.mxu0 }
 0x241   :  { %v2115_v7 = vpop.f32.mrf.mxu1  ;;  %v2114_v8 = vadd.f32 %v2113_v2, %v2073_v5  ;;  %v2120_v9 = vmax.f32 %v2112_v4, 0.0 }
 0x242   :  { %v2075_v53 = vpop.f32.mrf.mxu0 }
 0x243   :  { %v2116_v10 = vpop.f32.mrf.mxu1  ;;  %v2121_v55 = vmax.f32 %v2114_v8, 0.0  ;;  %v2124_v52 = vpack.c.bf16 %v2120_v9, %v2120_v9  ;;  %v2963_v8 = vpop.permute.xlu0 %2962 }
 0x245   :  { %v2125_v11 = vpack.c.bf16 %v2121_v55, %v2121_v55 }
 0x247   :  { %2595 = vmatprep.mubr.bf16.mxu1 %v2125_v11 }
 0x248   :  { %2596 = vmatmul.mubr.bf16.vlgmr.msra.gmra.mxu1 %v2124_v52 }
 0x249   :  { %2819 = vmatpush1.bf16.msra.mxu1 %v5672_v24  ;;  %2836 = vmatprep.mubr.bf16.mxu1 %v5471_v23 }
 0x24a   :  { %2906 = vmatprep.subr.bf16.mxu1 %v5156_v62  ;;  %v5182_v62 = vld [vmem:[#allocation12 + $0x38] sm:$0xff]  }
 0x250   :  { %4470 = vmatmul.mubr.msk.bf16.vlgmr.msra.gmra.mxu1 %vm2793_vm1, %v2786_v13  ;;  %v5184_v13 = vld [vmem:[#allocation12 + $0x28] sm:$0xff]  }
 0x251   :  { %2907 = vmatpush1.bf16.msra.mxu1 %v5154_v14  ;;  %2930 = vmatprep.mubr.bf16.mxu1 %v5471_v23  ;;  %v5185_v14 = vld [vmem:[#allocation12 + $0x20] sm:$0xff]  }
 0x252   :  { %2908 = vmatprep.subr.bf16.mxu1 %v5159_v15  ;;  %v5187_v15 = vld [vmem:[#allocation12 + $0x10] sm:$0xff]  }
 0x255   :  { %2909 = vmatpush1.bf16.msra.mxu1 %v5157_v18  ;;  %v5188_v18 = vld [vmem:[#allocation12 + $0x8] sm:$0xff]  }
 0x256   :  { %2910 = vmatprep.subr.bf16.mxu1 %v5162_v56  ;;  %v5189_v56 = vld [vmem:[#allocation12] sm:$0xff]  }
 0x259   :  { %2911 = vmatpush1.bf16.msra.mxu1 %v5160_v19  ;;  %v5190_v19 = vld [vmem:[#allocation12 + $0x58] sm:$0xff]  }
 0x25a   :  { %2912 = vmatprep.subr.bf16.mxu1 %v5165_v20  ;;  %v5191_v20 = vld [vmem:[#allocation12 + $0x50] sm:$0xff]  }
 0x25d   :  { %2913 = vmatpush1.bf16.msra.mxu1 %v5163_v21  ;;  %v5192_v21 = vld [vmem:[#allocation12 + $0x48] sm:$0xff]  }
 0x25e   :  { %3098 = vmatprep.subr.bf16.mxu1 %v5471_v23 }
 0x260   :  { %4479 = vmatmul.mubr.msk.bf16.vlgmr.msra.gmra.mxu1 %vm2894_vm2, %v2845_v22  ;;  %v5193_v22 = vld [vmem:[#allocation12 + $0x40] sm:$0xff]  }
 0x261   :  { %3099 = vmatpush1.bf16.msra.mxu1 %v5182_v62  ;;  %v5208_v62 = vld [vmem:[#allocation13 + $0x50] ss:$8 sps:$4 sm:$0xff]  }
 0x262   :  { %3100 = vmatprep.subr.bf16.mxu1 %v5471_v23 }
 0x265   :  { %3101 = vmatpush1.bf16.msra.mxu1 %v5183_v12  ;;  %v5213_v12 = vld [vmem:[#allocation13 + $0x44] ss:$8 sps:$4 sm:$0xff]  }
 0x266   :  { %3102 = vmatprep.subr.bf16.mxu1 %v5471_v23 }
 0x269   :  { %3103 = vmatpush1.bf16.msra.mxu1 %v5184_v13  ;;  %v5211_v13 = vld [vmem:[#allocation13 + $0x40] ss:$8 sps:$4 sm:$0xff]  }
 0x26a   :  { %3104 = vmatprep.subr.bf16.mxu1 %v5471_v23 }
 0x26d   :  { %3105 = vmatpush1.bf16.msra.mxu1 %v5185_v14  ;;  %v5216_v14 = vld [vmem:[#allocation13 + $0x34] ss:$8 sps:$4 sm:$0xff]  }
 0x26e   :  { %3106 = vmatprep.subr.bf16.mxu1 %v5471_v23 }
 0x288   :  { %v2556_v24 = vpop.f32.mrf.mxu0 }
 0x289   :  { %v2557_v39 = vadd.f32 %v2556_v24, %v2195_v35 }
 0x28a   :  { %v2558_v27 = vpop.f32.mrf.mxu0 }
 0x28b   :  { %v2559_v41 = vadd.f32 %v2558_v27, %v2199_v37  ;;  %v5472_v37 = vmov 0.0  }
 0x28c   :  { %v2560_v29 = vpop.f32.mrf.mxu0  ;;  %4620 = vmatprep.subr.bf16.mxu0 %v5472_v37 }
 0x28d   :  { %v4450_v29 = vld [vmem:[#allocation16 + $0x6] ss:$0 sm:$0xff] }
 0x28e   :  { %v2561_v30 = vpop.f32.mrf.mxu0 }
 0x308   :  { %v2597_v40 = vpop.f32.mrf.mxu1 }
 0x309   :  { %v2598_v42 = vadd.f32 %v2597_v40, %v2557_v39 }
 0x30a   :  { %v2599_v44 = vpop.f32.mrf.mxu1 }
 0x30b   :  { %v2600_v45 = vadd.f32 %v2599_v44, %v2559_v41  ;;  %v2604_v46 = vmax.f32 %v2598_v42, 0.0  ;;  %v5195_v41 = vld [vmem:[%s5866_s10 + $0x30] sm:$0xff]  }
 0x30c   :  { %v2601_v47 = vpop.f32.mrf.mxu1 }
 0x30d   :  { %v2605_v48 = vmax.f32 %v2600_v45, 0.0  ;;  %v2606_v59 = vpack.c.bf16 %v2604_v46, %v2604_v46  ;;  %v5196_v47 = vld [vmem:[%s5866_s10 + $0x28] sm:$0xff]  }
 0x30e   :  { %v2602_v50 = vpop.f32.mrf.mxu1 }
 0x30f   :  { %v2607_v16 = vpack.c.bf16 %v2605_v48, %v2605_v48  ;;  %v5197_v48 = vld [vmem:[%s5866_s10 + $0x20] sm:$0xff]   ;;  %v5198_v50 = vld [vmem:[%s5866_s10 + $0x18] sm:$0xff]  }
 0x310   :  { %v2838_v60 = vpop.f32.mrf.mxu1 }
 0x311   :  { %2775 = vmatprep.mubr.bf16.mxu0 %v2607_v16  ;;  %v5199_v16 = vld [vmem:[%s5866_s10 + $0x10] sm:$0xff]  }
 0x312   :  { %2776 = vmatmul.mubr.bf16.vlgmr.msra.gmra.mxu0 %v2606_v59  ;;  %v2840_v61 = vpop.f32.mrf.mxu1 }
 0x313   :  { %v2961_v10 = vadd.f32 %v5678_v36, %v2840_v61  ;;  %v5186_v36 = vld [vmem:[#allocation12 + $0x18] sm:$0xff]   ;;  %4621 = vmatpush3.bf16.msra.mxu0 %v5194_v32  ;;  %4636 = vmatprep.mubr.msk.bf16.mxu0 %vm5473_vm3, %v5472_v37  ;;  %v5225_v32 = vld [vmem:[#allocation13 + $0x4] ss:$8 sps:$4 sm:$0xff]  }
 0x314   :  { %v2842_v63 = vpop.f32.mrf.mxu1  ;;  %3107 = vmatpush1.bf16.msra.mxu1 %v5186_v36  ;;  %4622 = vmatprep.subr.bf16.mxu0 %v5472_v37  ;;  %v5214_v36 = vld [vmem:[#allocation13 + $0x30] ss:$8 sps:$4 sm:$0xff]  }
 0x315   :  { %3108 = vmatprep.subr.bf16.mxu1 %v5471_v23 }
 0x316   :  { %v2843_v0 = vpop.f32.mrf.mxu1 }
 0x317   :  { %4623 = vmatpush3.bf16.msra.mxu0 %v5195_v41  ;;  %v3485_v41 = vld [vmem:[#allocation15 + $0x1c0] sm:$0xff] }
 0x318   :  { %3109 = vmatpush1.bf16.msra.mxu1 %v5187_v15  ;;  %4624 = vmatprep.subr.bf16.mxu0 %v5472_v37  ;;  %v5219_v15 = vld [vmem:[#allocation13 + $0x24] ss:$8 sps:$4 sm:$0xff]  }
 0x319   :  { %3110 = vmatprep.subr.bf16.mxu1 %v5471_v23 }
 0x31b   :  { %4625 = vmatpush3.bf16.msra.mxu0 %v5196_v47 }
 0x31c   :  { %3111 = vmatpush1.bf16.msra.mxu1 %v5188_v18  ;;  %4626 = vmatprep.subr.bf16.mxu0 %v5472_v37  ;;  %v5217_v18 = vld [vmem:[#allocation13 + $0x20] ss:$8 sps:$4 sm:$0xff]  }
 0x31d   :  { %3112 = vmatprep.subr.bf16.mxu1 %v5471_v23 }
 0x31f   :  { %4627 = vmatpush3.bf16.msra.mxu0 %v5197_v48  ;;  %v3490_v48 = vld [vmem:[#allocation15 + $0x1e8] sm:$0xff] }
 0x320   :  { %v2932_v33 = vpop.f32.mrf.mxu1  ;;  %3113 = vmatpush1.bf16.msra.mxu1 %v5189_v56  ;;  %4628 = vmatprep.subr.bf16.mxu0 %v5472_v37  ;;  %v5222_v56 = vld [vmem:[#allocation13 + $0x14] ss:$8 sps:$4 sm:$0xff]  }
 0x321   :  { %v2939_v34 = vadd.f32 %v2932_v33, %v2838_v60  ;;  %3122 = vmatprep.subr.bf16.mxu1 %v5471_v23 }
 0x322   :  { %v2934_v58 = vpop.f32.mrf.mxu1 }
 0x323   :  { %v2947_v1 = vadd.f32 %v4480_v54, %v2939_v34  ;;  %v2965_v9 = vadd.f32 %v2963_v8, %v2934_v58  ;;  %4629 = vmatpush3.bf16.msra.mxu0 %v5198_v50  ;;  %v5200_v54 = vld [vmem:[%s5866_s10 + $0x8] sm:$0xff]   ;;  %v5201_v34 = vld [vmem:[%s5866_s10] sm:$0xff]  }
 0x324   :  { %v2936_v2 = vpop.f32.mrf.mxu1  ;;  %3123 = vmatpush2.bf16.msra.mxu1 %v5190_v19  ;;  %4630 = vmatprep.subr.bf16.mxu0 %v5472_v37  ;;  %v3261_v58 = vld [vmem:[%s5859_s3] sm:$0x3]  ;;  %v5220_v19 = vld [vmem:[#allocation13 + $0x10] ss:$8 sps:$4 sm:$0xff]   ;;  %v3477_v50 = vld [vmem:[#allocation15 + $0x180] sm:$0xff] }
 0x325   :  { %v4481_v4 = vmul.f32 -1.442695, %v2947_v1  ;;  %3124 = vmatprep.subr.bf16.mxu1 %v5471_v23  ;;  %v4483_v1 = vld [vmem:[#allocation16 + $0x9] ss:$0 sm:$0xff] }
 0x326   :  { %v2937_v5 = vpop.f32.mrf.mxu1 }
 0x327   :  { %5226 = vpow2.f32 %v4481_v4  ;;  %4631 = vmatpush3.bf16.msra.mxu0 %v5199_v16  ;;  %v3481_v16 = vld [vmem:[#allocation15 + $0x1a0] sm:$0xff] }
 0x328   :  { %3125 = vmatpush2.bf16.msra.mxu1 %v5191_v20  ;;  %4632 = vmatprep.subr.bf16.mxu0 %v5472_v37  ;;  %v4497_v20 = vld [vmem:[#allocation16 + $0xa] ss:$0 sm:$0xff] }
 0x329   :  { %3126 = vmatprep.subr.bf16.mxu1 %v5471_v23 }
 0x32b   :  { %4633 = vmatpush3.bf16.msra.mxu0 %v5200_v54  ;;  %v4570_v54 = vcombine.low %v3477_v50, %v3481_v16 }
 0x32c   :  { %3127 = vmatpush2.bf16.msra.mxu1 %v5192_v21  ;;  %4634 = vmatprep.subr.bf16.mxu0 %v5472_v37 }
 0x32d   :  { %3128 = vmatprep.subr.bf16.mxu1 %v5471_v23 }
 0x32f   :  { %4635 = vmatpush3.bf16.msra.mxu0 %v5201_v34  ;;  %v3469_v34 = vld [vmem:[#allocation15 + $0x140] sm:$0xff] }
 0x330   :  { %3129 = vmatpush2.bf16.msra.mxu1 %v5193_v22 }
 0x334   :  { %v5227_v6 = vpop.eup %5226 }
 0x335   :  { %v2951_v7 = vadd.f32 1.0, %v5227_v6 }
 0x337   :  { %5228 = vrcp.f32 %v2951_v7 }
 0x344   :  { %v5229_v53 = vpop.eup %5228 }
 0x345   :  { %v2966_v55 = vmul.f32 %v5229_v53, %v2965_v9  ;;  %v2969_v27 = vsub.f32 1.0, %v5229_v53  ;;  %v2979_v39 = vmul.f32 %v5229_v53, %v2977_v28  ;;  %v5202_v53 = vld [vmem:[#allocation13 + $0x70] ss:$8 sps:$4 sm:$0xff]  }
 0x347   :  { %v2967_v11 = vadd.f32 %v2966_v55, %v2961_v10  ;;  %v5204_v10 = vld [vmem:[#allocation13 + $0x74] ss:$8 sps:$4 sm:$0xff]   ;;  %v5207_v55 = vld [vmem:[#allocation13 + $0x64] ss:$8 sps:$4 sm:$0xff]  }
 0x348   :  { %3385 = vmatprep.subr.bf16.mxu0 %v5204_v10  ;;  %v3457_v10 = vld [vmem:[#allocation15 + $0xe0] sm:$0xff] }
 0x349   :  { %5230 = vtanh.f32 %v2967_v11  ;;  %v5205_v11 = vld [vmem:[#allocation13 + $0x60] ss:$8 sps:$4 sm:$0xff]  }
 0x356   :  { %v5231_v52 = vpop.eup %5230 }
 0x357   :  { %2971 = vrot.lane.b32.xlu0 %v5231_v52, %s5464_s4  ;;  %v5210_v52 = vld [vmem:[#allocation13 + $0x54] ss:$8 sps:$4 sm:$0xff]  }
 0x35b   :  { %3263 = vrot.lane.b32.xlu0 %v3261_v58, %s5464_s4  ;;  %v3473_v58 = vld [vmem:[#allocation15 + $0x160] sm:$0xff] }
 0x3c9   :  { %v2972_v24 = vpop.permute.xlu0 %2971 }
 0x3ca   :  { %v2974_v30 = vmul.f32 %v2972_v24, %v2969_v27 }
 0x3cc   :  { %v5766_v44 = vadd.f32 %v2979_v39, %v2974_v30 }
 0x3d2   :  { %v4605_v26 = vpop.f32.mrf.mxu0 }
 0x3d4   :  { %v4606_v25 = vpop.f32.mrf.mxu0 }
 0x3d5   :  { %v4607_v31 = vadd.f32 %v4606_v25, %v4605_v26 }
 0x3d6   :  { %v4608_v35 = vpop.f32.mrf.mxu0 }
 0x3d7   :  { %v2778_v40 = vadd.f32 %v4607_v31, %v4450_v29  ;;  %v5223_v35 = vld [vmem:[#allocation13] ss:$8 sps:$4 sm:$0xff]  }
 0x3d8   :  { %v4609_v42 = vpop.f32.mrf.mxu0 }
 0x3d9   :  { %v2783_v45 = vmax.f32 %v2778_v40, 0.0  ;;  %v3489_v42 = vld [vmem:[#allocation15 + $0x1e0] sm:$0xff] }
 0x3da   :  { %v4579_v47 = vcombine.high %v3485_v41, %v3489_v42 }
 0x3db   :  { %v4663_v46 = vpack.i.bf16 %v2783_v45, %v5766_v44  ;;  %v5800_v45 = vld [vmem:[#allocation15 + $0x1c8] sm:$0xff] }
 0x3dc   :  { %3855 = vmatprep.subr.bf16.mxu1 %v4579_v47  ;;  %v3438_v47 = vld [vmem:[#allocation15 + $0x48] sm:$0xff] }
 0x3dd   :  { %4664 = vrot.lane.b32.xlu1 %v4663_v46, %s5464_s4  ;;  %v4578_v46 = vcombine.low %v3485_v41, %v3489_v42  ;;  %v3446_v41 = vld [vmem:[#allocation15 + $0x88] sm:$0xff] }
 0x3de   :  { %v3450_v42 = vld [vmem:[#allocation15 + $0xa8] sm:$0xff] }
 0x44f   :  { %v4665_v59 = vpop.permute.xlu1 %4664 }
 0x450   :  { %v4667_v60 = vunpack.i.h.bf16 %v4665_v59  ;;  %v4666_v61 = vunpack.i.l.bf16 %v4665_v59 }
 0x452   :  { %v2991_v63 = vpack.c.bf16 %v4667_v60, %v4667_v60  ;;  %v2989_v0 = vsel %vm2894_vm2, %v4666_v61, %v4667_v60  ;;  %v4580_v60 = vcombine.low %v5800_v45, %v3490_v48  ;;  %v4581_v61 = vcombine.high %v5800_v45, %v3490_v48  ;;  %v3442_v48 = vld [vmem:[#allocation15 + $0x68] sm:$0xff] }
 0x453   :  { %v2990_v33 = vpack.c.bf16 %v2989_v0, %v2989_v0  ;;  %v4571_v0 = vcombine.high %v3477_v50, %v3481_v16  ;;  %v4540_v50 = vcombine.low %v3446_v41, %v3450_v42  ;;  %v4533_v16 = vcombine.high %v3438_v47, %v3442_v48 }
 0x454   :  { %4496 = vmatprep.mubr.msk.bf16.mxu1 %vm2894_vm2, %v2991_v63  ;;  %v3264_v63 = vpop.permute.xlu0 %3263 }
 0x455   :  { %3131 = vmatmul.mubr.bf16.vlgmr.msra.gmra.mxu1 %v2990_v33 }
 0x456   :  { %3887 = vmatprep.mubr.bf16.mxu1 %v5471_v23  ;;  %3856 = vmatpush1.bf16.msra.mxu1 %v4578_v46  ;;  %v4541_v46 = vcombine.high %v3446_v41, %v3450_v42  ;;  %v3468_v41 = vld [vmem:[#allocation15 + $0x138] sm:$0xff] }
 0x457   :  { %3857 = vmatprep.subr.bf16.mxu1 %v4571_v0 }
 0x45a   :  { %3858 = vmatpush1.bf16.msra.mxu1 %v4570_v54 }
 0x515   :  { %v3132_v2 = vpop.f32.mrf.mxu1 }
 0x516   :  { %v3133_v4 = vadd.f32 %v4483_v1, %v3132_v2 }
 0x517   :  { %v3134_v5 = vpop.f32.mrf.mxu1 }
 0x518   :  { %v3138_v6 = vmax.f32 %v3133_v4, 0.0  ;;  %v4563_v4 = vcombine.high %v3469_v34, %v3473_v58  ;;  %v4562_v5 = vcombine.low %v3469_v34, %v3473_v58 }
 0x519   :  { %v3135_v7 = vpop.f32.mrf.mxu1 }
 0x51a   :  { %v3139_v8 = vpack.c.bf16 %v3138_v6, %v3138_v6  ;;  %3859 = vmatprep.subr.bf16.mxu1 %v4563_v4  ;;  %v3461_v6 = vld [vmem:[#allocation15 + $0x100] sm:$0xff]  ;;  %v3488_v4 = vld [vmem:[#allocation15 + $0x1d8] sm:$0xff] }
 0x51b   :  { %v3136_v9 = vpop.f32.mrf.mxu1  ;;  %v3465_v7 = vld [vmem:[#allocation15 + $0x120] sm:$0xff]  ;;  %3860 = vmatpush1.bf16.msra.mxu1 %v4562_v5 }
 0x51c   :  { %4637 = vmatmul.mubr.bf16.vlgmr.msra.gmra.mxu0 %v3139_v8  ;;  %v4555_v8 = vcombine.high %v3461_v6, %v3465_v7  ;;  %v4554_v9 = vcombine.low %v3461_v6, %v3465_v7  ;;  %v3492_v6 = vld [vmem:[#allocation15 + $0x1f8] sm:$0xff] }
 0x51d   :  { %3417 = vmatprep.mubr.bf16.mxu0 %v5471_v23  ;;  %3386 = vmatpush1.bf16.msra.mxu0 %v5202_v53  ;;  %v3453_v53 = vld [vmem:[#allocation15 + $0xc0] sm:$0xff] }
 0x51e   :  { %3387 = vmatprep.subr.bf16.mxu0 %v5207_v55  ;;  %3861 = vmatprep.subr.bf16.mxu1 %v4555_v8  ;;  %v4547_v55 = vcombine.high %v3453_v53, %v3457_v10  ;;  %v4584_v8 = vcombine.low %v3488_v4, %v3492_v6 }
 0x51f   :  { %3862 = vmatpush1.bf16.msra.mxu1 %v4554_v9  ;;  %v4585_v9 = vcombine.high %v3488_v4, %v3492_v6  ;;  %v3443_v6 = vld [vmem:[#allocation15 + $0x70] sm:$0xff] }
 0x520   :  { %3863 = vmatprep.subr.bf16.mxu1 %v4547_v55 }
 0x521   :  { %3388 = vmatpush1.bf16.msra.mxu0 %v5205_v11  ;;  %v4546_v11 = vcombine.low %v3453_v53, %v3457_v10  ;;  %v3293_v53 = vld [vmem:[#allocation16 + $0xb] sm:$0x3] }
 0x522   :  { %3389 = vmatprep.subr.bf16.mxu0 %v5210_v52  ;;  %v3445_v52 = vld [vmem:[#allocation15 + $0x80] sm:$0xff]  ;;  %v3298_v10 = vrot.slane %v3293_v53, %v5656_v51  ;;  %v3302_v55 = vrot.slane %v3293_v53, %v5661_v3 }
 0x523   :  { %3864 = vmatpush1.bf16.msra.mxu1 %v4546_v11 }
 0x525   :  { %3390 = vmatpush1.bf16.msra.mxu0 %v5208_v62  ;;  %v3449_v62 = vld [vmem:[#allocation15 + $0xa0] sm:$0xff] }
 0x526   :  { %3391 = vmatprep.subr.bf16.mxu0 %v5213_v12  ;;  %v4539_v12 = vcombine.high %v3445_v52, %v3449_v62 }
 0x528   :  { %3865 = vmatprep.subr.bf16.mxu1 %v4539_v12  ;;  %v3479_v12 = vld [vmem:[#allocation15 + $0x190] sm:$0xff] }
 0x529   :  { %3392 = vmatpush1.bf16.msra.mxu0 %v5211_v13  ;;  %v4538_v13 = vcombine.low %v3445_v52, %v3449_v62 }
 0x52a   :  { %3393 = vmatprep.subr.bf16.mxu0 %v5216_v14  ;;  %v3437_v14 = vld [vmem:[#allocation15 + $0x40] sm:$0xff] }
 0x52b   :  { %3866 = vmatpush1.bf16.msra.mxu1 %v4538_v13  ;;  %v3483_v13 = vld [vmem:[#allocation15 + $0x1b0] sm:$0xff] }
 0x52d   :  { %3394 = vmatpush1.bf16.msra.mxu0 %v5214_v36  ;;  %v3441_v36 = vld [vmem:[#allocation15 + $0x60] sm:$0xff] }
 0x52e   :  { %3395 = vmatprep.subr.bf16.mxu0 %v5219_v15  ;;  %v4531_v15 = vcombine.high %v3437_v14, %v3441_v36 }
 0x530   :  { %3867 = vmatprep.subr.bf16.mxu1 %v4531_v15  ;;  %v3480_v15 = vld [vmem:[#allocation15 + $0x198] sm:$0xff] }
 0x531   :  { %3396 = vmatpush1.bf16.msra.mxu0 %v5217_v18  ;;  %v4530_v18 = vcombine.low %v3437_v14, %v3441_v36 }
 0x532   :  { %3397 = vmatprep.subr.bf16.mxu0 %v5222_v56 }
 0x533   :  { %3868 = vmatpush1.bf16.msra.mxu1 %v4530_v18  ;;  %v3484_v18 = vld [vmem:[#allocation15 + $0x1b8] sm:$0xff] }
 0x535   :  { %3398 = vmatpush1.bf16.msra.mxu0 %v5220_v19 }
 0x536   :  { %3399 = vmatprep.subr.bf16.mxu0 %v5225_v32 }
 0x539   :  { %3400 = vmatpush1.bf16.msra.mxu0 %v5223_v35  ;;  %v3454_v35 = vld [vmem:[#allocation15 + $0xc8] sm:$0xff] }
 0x53a   :  { %3896 = vmatprep.subr.bf16.mxu0 %v4581_v61  ;;  %v3433_v61 = vld [vmem:[#allocation15 + $0x20] sm:$0xff] }
 0x5dc   :  { %v3245_v21 = vpop.f32.mrf.mxu0 }
 0x5dd   :  { %v5796_v22 = vadd.f32 %v4497_v20, %v3245_v21  ;;  %v3478_v20 = vld [vmem:[#allocation15 + $0x188] sm:$0xff] }
 0x5de   :  { %v4638_v24 = vpop.f32.mrf.mxu0  ;;  %v3482_v21 = vld [vmem:[#allocation15 + $0x1a8] sm:$0xff] }
 0x5df   :  { %v3252_v26 = vand.u32 2147483647, %v5796_v22  ;;  %v3251_v39 = vmax.f32 %v5796_v22, 0.0 }
 0x5e0   :  { %v3248_v27 = vpop.f32.mrf.mxu0 }
 0x5e1   :  { %v3253_v28 = vsub.f32 0.0, %v3252_v26  ;;  %v4573_v27 = vcombine.high %v3478_v20, %v3482_v21 }
 0x5e2   :  { %v4639_v29 = vpop.f32.mrf.mxu0 }
 0x5e3   :  { %v3254_v25 = vmul.f32 1.442695, %v3253_v28  ;;  %v3470_v28 = vld [vmem:[#allocation15 + $0x148] sm:$0xff] }
 0x5e4   :  { %v3474_v29 = vld [vmem:[#allocation15 + $0x168] sm:$0xff] }
 0x5e5   :  { %5232 = vpow2.f32 %v3254_v25  ;;  %v4572_v25 = vcombine.low %v3478_v20, %v3482_v21  ;;  %v4564_v32 = vcombine.low %v3470_v28, %v3474_v29 }
 0x5f2   :  { %v5233_v30 = vpop.eup %5232 }
 0x5f3   :  { %v3256_v31 = vadd.f32 1.0, %v5233_v30  ;;  %v3462_v30 = vld [vmem:[#allocation15 + $0x108] sm:$0xff] }
 0x5f5   :  { %5234 = vlog2.f32 %v3256_v31  ;;  %v3466_v31 = vld [vmem:[#allocation15 + $0x128] sm:$0xff] }
 0x602   :  { %v5235_v37 = vpop.eup %5234 }
 0x603   :  { %v3258_v40 = vmul.f32 0.6931472, %v5235_v37  ;;  %v3458_v37 = vld [vmem:[#allocation15 + $0xe8] sm:$0xff] }
 0x604   :  { %v4548_v45 = vcombine.low %v3454_v35, %v3458_v37 }
 0x605   :  { %v3259_v59 = vadd.f32 %v3258_v40, %v3251_v39  ;;  %v4556_v39 = vcombine.low %v3462_v30, %v3466_v31  ;;  %v4549_v40 = vcombine.high %v3454_v35, %v3458_v37  ;;  %v3463_v37 = vld [vmem:[#allocation15 + $0x110] sm:$0xff] }
 0x607   :  { %v3260_v33 = vadd.f32 0.1, %v3259_v59  ;;  %v4532_v59 = vcombine.low %v3438_v47, %v3442_v48  ;;  %v3455_v48 = vld [vmem:[#allocation15 + $0xd0] sm:$0xff] }
 0x609   :  { %v3266_v1 = vmul.f32 %v3264_v63, %v3260_v33  ;;  %v3273_v2 = vsel %vm2894_vm2, %v5796_v22, %v3260_v33  ;;  %v3430_v63 = vld [vmem:[#allocation15 + $0x8] sm:$0xff] }
 0x60a   :  { %3274 = vst [vmem:[%s5871_s15] sm:$0x3] %v3273_v2  ;;  %v3434_v33 = vld [vmem:[#allocation15 + $0x28] sm:$0xff]  ;;  %v3491_v2 = vld [vmem:[#allocation15 + $0x1f0] sm:$0xff] }
 0x60b   :  { %3268 = vrot.lane.b32.xlu1 %v3266_v1, %s5464_s4  ;;  %v4524_v34 = vcombine.low %v3430_v63, %v3434_v33  ;;  %v4525_v58 = vcombine.high %v3430_v63, %v3434_v33  ;;  %v3487_v1 = vld [vmem:[#allocation15 + $0x1d0] sm:$0xff] }
 0x60c   :  { %v4583_v5 = vcombine.high %v3487_v1, %v3491_v2  ;;  %v4582_v7 = vcombine.low %v3487_v1, %v3491_v2  ;;  %v3451_v33 = vld [vmem:[#allocation15 + $0xb0] sm:$0xff] }
 0x67d   :  { %v3269_v56 = vpop.permute.xlu1 %3268 }
 0x67e   :  { %v3271_v19 = vadd.f32 %v3269_v56, %v5796_v22  ;;  %v4565_v22 = vcombine.high %v3470_v28, %v3474_v29  ;;  %v4577_v28 = vcombine.high %v3480_v15, %v3484_v18  ;;  %v3475_v29 = vld [vmem:[#allocation15 + $0x170] sm:$0xff] }
 0x680   :  { %v3272_v24 = vsel %vm2894_vm2, %v3271_v19, %v5766_v44  ;;  %v4557_v44 = vcombine.high %v3462_v30, %v3466_v31  ;;  %v4586_v19 = vld [vmem:[#allocation16 + $0x16] ss:$0 sm:$0xff]  ;;  %v4574_v31 = vcombine.low %v3479_v12, %v3483_v13 }
 0x681   :  { %3275 = vst [vmem:[%s5871_s15 + $0x2] sm:$0x3] %v3272_v24  ;;  %v3276_v26 = vpack.c.bf16 %v3272_v24, %v3272_v24  ;;  %v4575_v24 = vcombine.high %v3479_v12, %v3483_v13  ;;  %v3436_v12 = vld [vmem:[#allocation15 + $0x38] sm:$0xff] }
 0x683   :  { %3418 = vmatmul.mubr.bf16.vlgmr.msra.gmra.mxu0 %v3276_v26  ;;  %v3471_v26 = vld [vmem:[#allocation15 + $0x150] sm:$0xff] }
 0x684   :  { %3897 = vmatpush1.bf16.msra.mxu0 %v4580_v60  ;;  %3928 = vmatprep.mubr.bf16.mxu0 %v5471_v23  ;;  %v3429_v60 = vld [vmem:[#allocation15] sm:$0xff]  ;;  %v4566_v42 = vcombine.low %v3471_v26, %v3475_v29 }
 0x685   :  { %3898 = vmatprep.subr.bf16.mxu0 %v4573_v27  ;;  %v4523_v0 = vcombine.high %v3429_v60, %v3433_v61  ;;  %v4522_v54 = vcombine.low %v3429_v60, %v3433_v61 }
 0x687   :  { %3869 = vmatprep.subr.bf16.mxu1 %v4523_v0  ;;  %v3447_v0 = vld [vmem:[#allocation15 + $0x90] sm:$0xff] }
 0x688   :  { %3899 = vmatpush1.bf16.msra.mxu0 %v4572_v25  ;;  %3870 = vmatpush1.bf16.msra.mxu1 %v4522_v54  ;;  %v3472_v25 = vld [vmem:[#allocation15 + $0x158] sm:$0xff]  ;;  %v4543_v2 = vcombine.high %v3447_v0, %v3451_v33 }
 0x689   :  { %3900 = vmatprep.subr.bf16.mxu0 %v4565_v22  ;;  %3937 = vmatprep.subr.bf16.mxu1 %v4583_v5  ;;  %v3476_v22 = vld [vmem:[#allocation15 + $0x178] sm:$0xff]  ;;  %v3439_v5 = vld [vmem:[#allocation15 + $0x50] sm:$0xff] }
 0x68a   :  { %v4569_v35 = vcombine.high %v3472_v25, %v3476_v22  ;;  %v3448_v54 = vld [vmem:[#allocation15 + $0x98] sm:$0xff]  ;;  %v4534_v13 = vcombine.low %v3439_v5, %v3443_v6 }
 0x68c   :  { %3901 = vmatpush1.bf16.msra.mxu0 %v4564_v32  ;;  %v4576_v32 = vcombine.low %v3480_v15, %v3484_v18 }
 0x68d   :  { %3902 = vmatprep.subr.bf16.mxu0 %v4557_v44  ;;  %v4567_v44 = vcombine.high %v3471_v26, %v3475_v29  ;;  %v5474_v26 = vmov 1  }
 0x68e   :  { %4668 = vset.pattern.permute.xlu0 %v5474_v26 }
 0x690   :  { %3903 = vmatpush1.bf16.msra.mxu0 %v4556_v39  ;;  %v3467_v39 = vld [vmem:[#allocation15 + $0x130] sm:$0xff] }
 0x691   :  { %3904 = vmatprep.subr.bf16.mxu0 %v4549_v40  ;;  %v3464_v40 = vld [vmem:[#allocation15 + $0x118] sm:$0xff]  ;;  %v4558_v60 = vcombine.low %v3463_v37, %v3467_v39 }
 0x692   :  { %v4561_v47 = vcombine.high %v3464_v40, %v3468_v41  ;;  %v4560_v61 = vcombine.low %v3464_v40, %v3468_v41 }
 0x694   :  { %3905 = vmatpush1.bf16.msra.mxu0 %v4548_v45  ;;  %v4568_v45 = vcombine.low %v3472_v25, %v3476_v22  ;;  %v3493_v25 = vld [vmem:[#allocation16 + $0xd] sm:$0xff] }
 0x695   :  { %3906 = vmatprep.subr.bf16.mxu0 %v4541_v46  ;;  %v4559_v46 = vcombine.high %v3463_v37, %v3467_v39  ;;  %v3498_v22 = vrot.slane %v3493_v25, %v5656_v51 }
 0x698   :  { %3907 = vmatpush1.bf16.msra.mxu0 %v4540_v50  ;;  %v3459_v50 = vld [vmem:[#allocation15 + $0xf0] sm:$0xff] }
 0x699   :  { %3908 = vmatprep.subr.bf16.mxu0 %v4533_v16  ;;  %v3456_v16 = vld [vmem:[#allocation15 + $0xd8] sm:$0xff]  ;;  %v4551_v63 = vcombine.high %v3455_v48, %v3459_v50 }
 0x69c   :  { %3909 = vmatpush1.bf16.msra.mxu0 %v4532_v59  ;;  %v3460_v59 = vld [vmem:[#allocation15 + $0xf8] sm:$0xff] }
 0x69d   :  { %3910 = vmatprep.subr.bf16.mxu0 %v4525_v58  ;;  %v4550_v58 = vcombine.low %v3455_v48, %v3459_v50  ;;  %v4552_v1 = vcombine.low %v3456_v16, %v3460_v59 }
 0x6a0   :  { %3911 = vmatpush1.bf16.msra.mxu0 %v4524_v34  ;;  %v3452_v34 = vld [vmem:[#allocation15 + $0xb8] sm:$0xff] }
 0x6a1   :  { %3978 = vmatprep.subr.bf16.mxu0 %v4585_v9  ;;  %v4545_v4 = vcombine.high %v3448_v54, %v3452_v34  ;;  %v4542_v9 = vcombine.low %v3447_v0, %v3451_v33  ;;  %v4544_v53 = vcombine.low %v3448_v54, %v3452_v34 }
 0x743   :  { %v3419_v11 = vpop.f32.mrf.mxu0 }
 0x744   :  { %v3420_v52 = vadd.f32 %v3419_v11, %v3298_v10  ;;  %v4535_v10 = vcombine.high %v3439_v5, %v3443_v6  ;;  %v3431_v11 = vld [vmem:[#allocation15 + $0x10] sm:$0xff] }
 0x745   :  { %v3421_v62 = vpop.f32.mrf.mxu0 }
 0x746   :  { %v3426_v14 = vmax.f32 %v3420_v52, 0.0  ;;  %v3422_v36 = vadd.f32 %v3421_v62, %v3302_v55  ;;  %v3435_v52 = vld [vmem:[#allocation15 + $0x30] sm:$0xff]  ;;  %v3432_v62 = vld [vmem:[#allocation15 + $0x18] sm:$0xff] }
 0x747   :  { %v3423_v56 = vpop.f32.mrf.mxu0  ;;  %v4529_v15 = vcombine.high %v3432_v62, %v3436_v12  ;;  %v4526_v18 = vcombine.low %v3431_v11, %v3435_v52 }
 0x748   :  { %v5819_v20 = vpack.c.bf16 %v3426_v14, %v3426_v14  ;;  %v3427_v21 = vmax.f32 %v3422_v36, 0.0  ;;  %v4527_v36 = vcombine.high %v3431_v11, %v3435_v52  ;;  %v4528_v56 = vcombine.low %v3432_v62, %v3436_v12 }
 0x749   :  { %v3424_v27 = vpop.f32.mrf.mxu0 }
 0x74a   :  { %3888 = vmatmul.mubr.bf16.vlgmr.msra.gmra.mxu1 %v5819_v20  ;;  %3929 = vmatmul.mubr.bf16.vlgmr.msra.gmra.mxu0 %v5819_v20  ;;  %v5823_v30 = vmul.f32 %v4586_v19, %v3427_v21  ;;  %v4587_v27 = vld [vmem:[#allocation16 + $0x15] ss:$0 sm:$0xff] }
 0x74b   :  { %3938 = vmatpush1.bf16.msra.mxu1 %v4582_v7  ;;  %3979 = vmatpush1.bf16.msra.mxu0 %v4584_v8  ;;  %v3440_v7 = vld [vmem:[#allocation15 + $0x58] sm:$0xff] }
 0x74c   :  { %4086 = vrot.lane.b32.xlu0 %v5823_v30, %s5464_s4  ;;  %3939 = vmatprep.subr.bf16.mxu1 %v4575_v24  ;;  %v3444_v8 = vld [vmem:[#allocation15 + $0x78] sm:$0xff]  ;;  %v4074_v19 = vsel %vm4073_vm4, %v5823_v30, 0.0  ;;  %v3510_v30 = vrot.slane %v3493_v25, %v504_v17  ;;  %v3513_v17 = vsub.s32 4, %v5588_v43 }
 0x74d   :  { %3980 = vmatprep.subr.bf16.mxu0 %v4577_v28  ;;  %3969 = vmatprep.mubr.bf16.mxu1 %v5471_v23  ;;  %v4537_v55 = vcombine.high %v3440_v7, %v3444_v8  ;;  %v4536_v14 = vcombine.low %v3440_v7, %v3444_v8 }
 0x74e   :  { %4010 = vmatprep.mubr.bf16.mxu0 %v5471_v23  ;;  %v4553_v23 = vcombine.high %v3456_v16, %v3460_v59  ;;  %v3521_v59 = vsub.s32 6, %v5588_v43 }
 0x74f   :  { %3940 = vmatpush1.bf16.msra.mxu1 %v4574_v31  ;;  %3981 = vmatpush1.bf16.msra.mxu0 %v4576_v32  ;;  %v3506_v31 = vrot.slane %v3493_v25, %v500_v57 }
 0x750   :  { %3941 = vmatprep.subr.bf16.mxu1 %v4567_v44  ;;  %3982 = vmatprep.subr.bf16.mxu0 %v4569_v35 }
 0x753   :  { %3942 = vmatpush1.bf16.msra.mxu1 %v4566_v42  ;;  %3983 = vmatpush1.bf16.msra.mxu0 %v4568_v45 }
 0x754   :  { %3943 = vmatprep.subr.bf16.mxu1 %v4559_v46  ;;  %3984 = vmatprep.subr.bf16.mxu0 %v4561_v47 }
 0x757   :  { %3944 = vmatpush1.bf16.msra.mxu1 %v4558_v60  ;;  %3985 = vmatpush1.bf16.msra.mxu0 %v4560_v61  ;;  %v3517_v60 = vsub.s32 5, %v5588_v43  ;;  %v3525_v61 = vsub.s32 7, %v5588_v43 }
 0x758   :  { %3945 = vmatprep.subr.bf16.mxu1 %v4551_v63  ;;  %3986 = vmatprep.subr.bf16.mxu0 %v4553_v23  ;;  %v3514_v63 = vrot.slane %v3493_v25, %v3513_v17  ;;  %v3522_v23 = vrot.slane %v3493_v25, %v3521_v59 }
 0x759   :  { %v3518_v0 = vrot.slane %v3493_v25, %v3517_v60  ;;  %v3526_v33 = vrot.slane %v3493_v25, %v3525_v61 }
 0x75b   :  { %3946 = vmatpush1.bf16.msra.mxu1 %v4550_v58  ;;  %3987 = vmatpush1.bf16.msra.mxu0 %v4552_v1 }
 0x75c   :  { %3947 = vmatprep.subr.bf16.mxu1 %v4543_v2  ;;  %3988 = vmatprep.subr.bf16.mxu0 %v4545_v4 }
 0x75f   :  { %3948 = vmatpush1.bf16.msra.mxu1 %v4542_v9  ;;  %3989 = vmatpush1.bf16.msra.mxu0 %v4544_v53 }
 0x760   :  { %3949 = vmatprep.subr.bf16.mxu1 %v4535_v10  ;;  %3990 = vmatprep.subr.bf16.mxu0 %v4537_v55 }
 0x763   :  { %3950 = vmatpush1.bf16.msra.mxu1 %v4534_v13  ;;  %3991 = vmatpush1.bf16.msra.mxu0 %v4536_v14 }
 0x764   :  { %3951 = vmatprep.subr.bf16.mxu1 %v4527_v36  ;;  %3992 = vmatprep.subr.bf16.mxu0 %v4529_v15 }
 0x767   :  { %3952 = vmatpush1.bf16.msra.mxu1 %v4526_v18  ;;  %3993 = vmatpush1.bf16.msra.mxu0 %v4528_v56  ;;  %v4100_v18 = vand.u32 127, %v186_v38 }
 0x769   :  { %vm4107_vm5 = vcmp.eq.s32.totalorder %v4100_v18, 1  ;;  %vm4101_vm6 = vcmp.eq.s32.totalorder %v4100_v18, 0 }
 0x76a   :  { %3970 = vmatmul.mubr.bf16.vlgmr.msra.gmra.mxu1 %v5819_v20  ;;  %4011 = vmatmul.mubr.bf16.vlgmr.msra.gmra.mxu0 %v5819_v20  ;;  %v3502_v20 = vrot.slane %v3493_v25, %v5661_v3 }
 0x76b   :  { %4075 = vadd.xlane.f32.xlu0 %v4074_v19 }
 0x7be   :  { %v4087_v21 = vpop.permute.xlu0 %4086 }
 0x7bf   :  { %v4089_v24 = vsel %vm4073_vm4, %v4087_v21, 0.0 }
 0x7c0   :  { %4090 = vadd.xlane.f32.xlu1 %v4089_v24 }
 0x7f4   :  { %v4076_v28 = vpop.xlane.xlu0 %4075 }
 0x7f5   :  { %v4084_v29 = vadd.f32 %v4587_v27, %v4076_v28 }
 0x7f7   :  { %4104 = vperm.xlu1 %4669, %v4084_v29  }
 0x80a   :  { %v3889_v32 = vpop.f32.mrf.mxu1  ;;  %v3930_v44 = vpop.f32.mrf.mxu0 }
 0x80b   :  { %v3890_v39 = vadd.f32 %v3889_v32, %v3498_v22  ;;  %v3931_v40 = vadd.f32 %v3930_v44, %v3506_v31 }
 0x80c   :  { %v3891_v35 = vpop.f32.mrf.mxu1  ;;  %v3932_v37 = vpop.f32.mrf.mxu0 }
 0x80d   :  { %v3892_v41 = vadd.f32 %v3891_v35, %v3502_v20  ;;  %v3933_v42 = vadd.f32 %v3932_v37, %v3510_v30 }
 0x80e   :  { %v3893_v45 = vpop.f32.mrf.mxu1  ;;  %v3934_v46 = vpop.f32.mrf.mxu0 }
 0x80f   :  { %v4027_v47 = vcombine.low %v3890_v39, %v3892_v41  ;;  %v4028_v51 = vcombine.low %v3931_v40, %v3933_v42 }
 0x810   :  { %v3894_v48 = vpop.f32.mrf.mxu1  ;;  %v3935_v50 = vpop.f32.mrf.mxu0 }
 0x811   :  { %v4035_v57 = vrot.slane %v4027_v47, %v5591_v49  ;;  %v4042_v3 = vrot.slane %v4028_v51, %v5591_v49 }
 0x813   :  { %v4043_v16 = vcombine.low %v4035_v57, %v4042_v3 }
 0x815   :  { %4063 = vst [vmem:[%s5870_s14] sm:$0xff] %v4043_v16 }
 0x82a   :  { %v3971_v54 = vpop.f32.mrf.mxu1  ;;  %v4012_v34 = vpop.f32.mrf.mxu0 }
 0x82b   :  { %v3972_v2 = vadd.f32 %v3971_v54, %v3514_v63  ;;  %v4013_v4 = vadd.f32 %v4012_v34, %v3522_v23 }
 0x82c   :  { %v3973_v58 = vpop.f32.mrf.mxu1  ;;  %v4014_v1 = vpop.f32.mrf.mxu0 }
 0x82d   :  { %v3974_v5 = vadd.f32 %v3973_v58, %v3518_v0  ;;  %v4015_v6 = vadd.f32 %v4014_v1, %v3526_v33 }
 0x82e   :  { %v3975_v7 = vpop.f32.mrf.mxu1  ;;  %v4016_v8 = vpop.f32.mrf.mxu0 }
 0x82f   :  { %v4044_v9 = vcombine.low %v3972_v2, %v3974_v5  ;;  %v4045_v53 = vcombine.low %v4013_v4, %v4015_v6 }
 0x830   :  { %v3976_v10 = vpop.f32.mrf.mxu1  ;;  %v4017_v55 = vpop.f32.mrf.mxu0 }
 0x831   :  { %v4052_v43 = vrot.slane %v4044_v9, %v5591_v49  ;;  %v4059_v11 = vrot.slane %v4045_v53, %v5591_v49 }
 0x833   :  { %v4060_v52 = vcombine.low %v4052_v43, %v4059_v11 }
 0x835   :  { %4064 = vst [vmem:[%s5870_s14 + $0x8] sm:$0xff] %v4060_v52 }
 0x849   :  { %v4091_v62 = vpop.xlane.xlu1 %4090 }
 0x84a   :  { %v4092_v12 = vadd.f32 %v4587_v27, %v4091_v62 }
 0x84c   :  { %v4588_v13 = vmul.f32 -1.442695, %v4092_v12 }
 0x84e   :  { %5236 = vpow2.f32 %v4588_v13 }
 0x85b   :  { %v5237_v14 = vpop.eup %5236 }
 0x85c   :  { %v4096_v36 = vadd.f32 1.0, %v5237_v14 }
 0x85e   :  { %5238 = vrcp.f32 %v4096_v36 }
 0x86b   :  { %v5239_v15 = vpop.eup %5238 }
 0x86c   :  { %4110 = vperm.xlu0 %4668, %v5239_v15  }
 0x872   :  { %v4105_v49 = vpop.permute.xlu1 %4104 }
 0x8e7   :  { %v4111_v56 = vpop.permute.xlu0 %4110 }
 0x8e8   :  { %v4113_v19 = vsel %vm4107_vm5, %v4111_v56, 0.0 }
 0x8e9   :  { %v4114_v21 = vsel %vm4101_vm6, %v4105_v49, %v4113_v19 }
 0x8ea   :  { %4115 = vst [vmem:[%s5871_s15 + $0x4] sm:$0x3] %v4114_v21 }
 0x8eb   :  { %4124 = vsyncpa [#allocation3], 1 }
 0x8ec   :  { %4125 = vsyncpa [#allocation5], 1 }
 0x8ed   :  { %4126 = vsyncpa [#allocation8], 1 }
 0x8ee   :  { %4127 = vsyncpa [#allocation11], 1 }
 0x8ef   :  { %4128 = vsyncpa [#allocation14], 1 }
 0x8f0   :  { %4129 = vsyncpa [#allocation17], 1 }

</bundles_post_ra>
